<compile_context>
chip_gen: v6e
topology: v6e:2x2x1
jax: 0.10.0
libtpu: 0.0.40
codegen_flags: <defaults>
</compile_context>

<pallas_src>
import functools

import jax
import jax.numpy as jnp
from jax import lax
from jax.experimental import pallas as pl
from jax.experimental.pallas import tpu as pltpu

_LANE = 128
_NEG = -3.0e38          # sentinel that always loses the box max


def _round_up(n: int, m: int) -> int:
    return ((n + m - 1) // m) * m


def _icnn_logical_kernel(x_ref, fwt_ref, bcol_ref, w1t_ref, w2col_ref, u1col_ref,
                         l1_ref, out_ref, *, box_lo, box_hi):
    p = fwt_ref.shape[0]

    # Hoisted SMEM scalar reads of the tiny logical-layer weight table.
    n_log = l1_ref.shape[0]
    l1 = [(l1_ref[j, 0], l1_ref[j, 1]) for j in range(n_log)]

    # One fused MXU pass for every x-contraction (W0 / U0 / U1 / L0), batch on
    # the lane axis: xwT[p, t] = sum_d fwT[p, d] * x[t, d].  All biases are the
    # resident (P, 1) column broadcast -- no ones-column / x_aug copy needed.
    xwt = jnp.einsum('pd,td->pt', fwt_ref[...], x_ref[...],
                     preferred_element_type=jnp.float32)
    xwt = xwt + bcol_ref[...]                                       # (P, TB)

    # ICNN layer 0: rows [0, H1) are relu(W0 x + b0); relu runs full width, the
    # other rows hit exactly-zero columns of w1t below so they never contribute.
    z1 = jnp.maximum(xwt, 0.0)

    # ICNN layer 1: W1 is placed at rows [H1, H1+H2) x cols [0, H1) of w1t, so
    # the matmul output lines up with the U0 skip rows of xwt and the add + relu
    # run full width with no slicing.
    z2 = jnp.maximum(
        jnp.dot(w1t_ref[...], z1, preferred_element_type=jnp.float32) + xwt, 0.0)

    # ICNN output + U1/b2 skip: masked VPU multiplies + one sublane reduce.
    # w2col is zero outside the W1 output rows; u1col is 1 only on the U1 row.
    icnn = jnp.sum(z2 * w2col_ref[...] + xwt * u1col_ref[...],
                   axis=0, keepdims=True)                           # (1, TB)

    # Box layer: max over the L0 rows of xwt; every other row is masked to -3e38.
    row = lax.broadcasted_iota(jnp.int32, (p, 1), 0)
    box_mask = (row >= box_lo) & (row < box_hi)
    box = jnp.max(jnp.where(box_mask, xwt, _NEG),
                  axis=0, keepdims=True)                            # (1, TB)

    # Logical layer ls[1] + final max.  Result is already lane-dense (batch on
    # lanes), so the store writes full vregs.
    y = l1[0][0] * icnn + l1[0][1] * box
    for j in range(1, n_log):
        y = jnp.maximum(y, l1[j][0] * icnn + l1[j][1] * box)
    out_ref[...] = y                                                # (1, TB)


def _pack_params(params):
    """Pack every x-contracting weight into one lane group (trace time only)."""
    W0 = params["W0"].astype(jnp.float32); b0 = params["b0"].astype(jnp.float32)
    W1 = params["W1"].astype(jnp.float32); b1 = params["b1"].astype(jnp.float32)
    U0 = params["U0"].astype(jnp.float32)
    W2 = params["W2"].astype(jnp.float32); b2 = params["b2"].astype(jnp.float32)
    U1 = params["U1"].astype(jnp.float32)
    L0w = params["L0w"].astype(jnp.float32); L0b = params["L0b"].astype(jnp.float32)

    H1, D = W0.shape
    H2 = W1.shape[0]
    two_d = L0w.shape[0]
    assert W2.shape[0] == 1, "ICNNLogical requires a scalar ICNN output"

    o2 = H1 + H2                 # row of the U1 / b2 skip
    o3 = o2 + 1                  # first box (L0) row
    total = o3 + two_d
    P = _round_up(total, _LANE)  # 128 at the default widths (32+32+1+32 = 97)

    fwt = jnp.zeros((P, D), jnp.float32)
    fwt = (fwt.at[0:H1].set(W0)
              .at[H1:o2].set(U0)
              .at[o2:o3].set(U1)
              .at[o3:total].set(L0w))
    bcol = jnp.zeros((P, 1), jnp.float32)
    bcol = (bcol.at[0:H1, 0].set(b0.reshape(-1))
                .at[H1:o2, 0].set(b1.reshape(-1))
                .at[o2:o3, 0].set(b2.reshape(-1))
                .at[o3:total, 0].set(L0b.reshape(-1)))
    w1t = jnp.zeros((P, P), jnp.float32).at[H1:o2, 0:H1].set(W1)
    w2col = jnp.zeros((P, 1), jnp.float32).at[H1:o2, 0].set(W2.reshape(-1))
    u1col = jnp.zeros((P, 1), jnp.float32).at[o2, 0].set(1.0)
    l1w = params["L1w"].astype(jnp.float32)                      # (3, 2) -> SMEM
    return fwt, bcol, w1t, w2col, u1col, l1w, (o3, two_d)


def icnn_logical_forward(x, params, *, max_tile=1024):
    """x: (B, ...) flattened to (B, D). Returns (B,), matching torch.max(..., 1)[0]."""
    x = x.reshape(x.shape[0], -1).astype(jnp.float32)            # Flatten()
    B, D = x.shape

    fwt, bcol, w1t, w2col, u1col, l1w, (box_lo, two_d) = _pack_params(params)
    P = fwt.shape[0]

    if B <= max_tile:
        tb, nt = B, 1            # one full-array block: zero grid-step overhead
    else:
        nt = pl.cdiv(B, max_tile)
        if nt > 1 and nt % 2:
            nt += 1              # v7x megacore: even step count balances both TCs
        tb = _round_up(pl.cdiv(B, nt), 8)
        nt = pl.cdiv(B, tb)      # last block may be partial; rows are independent

    kernel = functools.partial(_icnn_logical_kernel,
                               box_lo=box_lo, box_hi=box_lo + two_d)

    flops = 2 * nt * tb * (D * P + P * P) + 10 * nt * tb * P
    bytes_accessed = 4 * (B * D + P * (D + P + 3) + int(l1w.size) + nt * tb)

    out = pl.pallas_call(
        kernel,
        out_shape=jax.ShapeDtypeStruct((nt, 1, tb), jnp.float32),
        grid_spec=pltpu.PrefetchScalarGridSpec(
            num_scalar_prefetch=0,
            grid=(nt,),
            in_specs=[
                pl.BlockSpec((tb, D), lambda i: (i, 0)),            # streamed x tiles
                pl.BlockSpec((P, D), lambda i: (0, 0)),             # fused W0/U0/U1/L0
                pl.BlockSpec((P, 1), lambda i: (0, 0)),             # fused bias column
                pl.BlockSpec((P, P), lambda i: (0, 0)),             # padded W1
                pl.BlockSpec((P, 1), lambda i: (0, 0)),             # W2 output column
                pl.BlockSpec((P, 1), lambda i: (0, 0)),             # U1 row selector
                pl.BlockSpec(l1w.shape, lambda i: (0, 0),
                             memory_space=pltpu.MemorySpace.SMEM),  # 3x2 logical weights
            ],
            out_specs=pl.BlockSpec((None, 1, tb), lambda i: (i, 0, 0)),  # lane-dense rows
        ),
        compiler_params=pltpu.CompilerParams(dimension_semantics=("parallel",)),
        cost_estimate=pl.CostEstimate(flops=flops, transcendentals=0,
                                      bytes_accessed=bytes_accessed),
    )(x, fwt, bcol, w1t, w2col, u1col, l1w)
    return out.reshape(-1)[:B]


def reference_forward(x, params):
    """Pure-JAX reference of ICNNLogical.forward for validation."""
    x = x.reshape(x.shape[0], -1).astype(jnp.float32)
    z1 = jax.nn.relu(x @ params["W0"].T + params["b0"])
    z2 = jax.nn.relu(z1 @ params["W1"].T + params["b1"] + x @ params["U0"].T)
    icnn = z2 @ params["W2"].T + params["b2"] + x @ params["U1"].T
    box = x @ params["L0w"].T + params["L0b"]
    box_max = jnp.max(box, axis=1, keepdims=True)
    x_in = jnp.concatenate([icnn, box_max], axis=1)
    y = x_in @ params["L1w"].T
    return jnp.max(y, axis=1)


def make_params(key, layer_widths):
    """Deterministic synthetic parameters matching ICNNLogical.__init__ shapes.

    layer_widths = [D, H1, H2, 1]   (last width must be 1, as the module requires)
    """
    D, H1, H2, OUT = layer_widths
    ks = jax.random.split(key, 8)
    scale = 0.1
    params = {
        # ws[0]: Linear(D, H1, bias=True)
        "W0": scale * jax.random.normal(ks[0], (H1, D), jnp.float32),
        "b0": scale * jax.random.normal(ks[1], (H1,), jnp.float32),
        # ws[1]: Linear(H1, H2, bias=True); us[0]: Linear(D, H2, bias=False)
        "W1": scale * jax.random.normal(ks[2], (H2, H1), jnp.float32),
        "b1": scale * jax.random.normal(ks[3], (H2,), jnp.float32),
        "U0": scale * jax.random.normal(ks[4], (H2, D), jnp.float32),
        # ws[2]: Linear(H2, 1, bias=True); us[1]: Linear(D, 1, bias=False)
        "W2": scale * jax.random.normal(ks[5], (OUT, H2), jnp.float32),
        "b2": jnp.zeros((OUT,), jnp.float32),
        "U1": scale * jax.random.normal(ks[6], (OUT, D), jnp.float32),
        # ls[0]: Linear(D, 2D, bias=True)
        "L0w": scale * jax.random.normal(ks[7], (2 * D, D), jnp.float32),
        "L0b": jnp.linspace(-0.5, 0.5, 2 * D).astype(jnp.float32),
        # ls[1]: Linear(2, 3, bias=False) -- fixed weights set in __init__
        "L1w": jnp.array([[2.0, 2.0], [2.0, 0.0], [0.0, 2.0]], jnp.float32),
    }
    return params


if __name__ == "__main__":
    key = jax.random.PRNGKey(0)
    B, D, H1, H2 = 300, 16, 32, 32          # small shapes; B=300 exercises ragged tiling
    layer_widths = [D, H1, H2, 1]

    kx, kp = jax.random.split(key)
    x = jax.random.normal(kx, (B, D), jnp.float32)
    params = make_params(kp, layer_widths)

    ref = reference_forward(x, params)

    # Default path: single full-array tile (grid of 1).
    out = jax.block_until_ready(icnn_logical_forward(x, params))
    assert out.shape == (B,)
    assert jnp.allclose(out, ref, atol=1e-4, rtol=1e-4), (out, ref)

    # Gridded path: several batch tiles with a partial last block.
    out_tiled = jax.block_until_ready(icnn_logical_forward(x, params, max_tile=128))
    assert out_tiled.shape == (B,)
    assert jnp.allclose(out_tiled, ref, atol=1e-4, rtol=1e-4), (out_tiled, ref)

    print("KERNEL_OK")
</pallas_src>

<mosaic_0001>
module attributes {stable_mosaic.version = 11 : i64} {
  func.func @_icnn_logical_kernel(%arg0: i32, %arg1: memref<300x16xf32, #tpu.memory_space<vmem>>, %arg2: memref<128x16xf32, #tpu.memory_space<vmem>>, %arg3: memref<128x1xf32, #tpu.memory_space<vmem>>, %arg4: memref<128x128xf32, #tpu.memory_space<vmem>>, %arg5: memref<128x1xf32, #tpu.memory_space<vmem>>, %arg6: memref<128x1xf32, #tpu.memory_space<vmem>>, %arg7: memref<3x2xf32, #tpu.memory_space<smem>>, %arg8: memref<1x1x300xf32, #tpu.memory_space<vmem>>) attributes {dimension_semantics = [#tpu.dimension_semantics<parallel>], iteration_bounds = array<i64: 1>, scalar_prefetch = 0 : i64, scratch_operands = 0 : i64, tpu.core_type = #tpu.core_type<tc>, window_params = [{transform_indices = @transform_0, window_bounds = array<i64: 300, 16>}, {pipeline_mode = #tpu.pipeline_mode<synchronous>, transform_indices = @transform_1, window_bounds = array<i64: 128, 16>}, {pipeline_mode = #tpu.pipeline_mode<synchronous>, transform_indices = @transform_2, window_bounds = array<i64: 128, 1>}, {pipeline_mode = #tpu.pipeline_mode<synchronous>, transform_indices = @transform_3, window_bounds = array<i64: 128, 128>}, {pipeline_mode = #tpu.pipeline_mode<synchronous>, transform_indices = @transform_4, window_bounds = array<i64: 128, 1>}, {pipeline_mode = #tpu.pipeline_mode<synchronous>, transform_indices = @transform_5, window_bounds = array<i64: 128, 1>}, {transform_indices = @transform_6, window_bounds = array<i64: 3, 2>}, {transform_indices = @transform_7, window_bounds = array<i64: 1, 1, 300>}]} {
    %c0 = arith.constant 0 : index
    %c0_0 = arith.constant 0 : index
    %0 = memref.load %arg7[%c0, %c0_0] : memref<3x2xf32, #tpu.memory_space<smem>>
    %c0_1 = arith.constant 0 : index
    %c1 = arith.constant 1 : index
    %1 = memref.load %arg7[%c0_1, %c1] : memref<3x2xf32, #tpu.memory_space<smem>>
    %c1_2 = arith.constant 1 : index
    %c0_3 = arith.constant 0 : index
    %2 = memref.load %arg7[%c1_2, %c0_3] : memref<3x2xf32, #tpu.memory_space<smem>>
    %c1_4 = arith.constant 1 : index
    %c1_5 = arith.constant 1 : index
    %3 = memref.load %arg7[%c1_4, %c1_5] : memref<3x2xf32, #tpu.memory_space<smem>>
    %c2 = arith.constant 2 : index
    %c0_6 = arith.constant 0 : index
    %4 = memref.load %arg7[%c2, %c0_6] : memref<3x2xf32, #tpu.memory_space<smem>>
    %c2_7 = arith.constant 2 : index
    %c1_8 = arith.constant 1 : index
    %5 = memref.load %arg7[%c2_7, %c1_8] : memref<3x2xf32, #tpu.memory_space<smem>>
    %c0_9 = arith.constant 0 : index
    %c0_10 = arith.constant 0 : index
    %6 = vector.load %arg2[%c0_9, %c0_10] : memref<128x16xf32, #tpu.memory_space<vmem>>, vector<128x16xf32>
    %c0_11 = arith.constant 0 : index
    %c0_12 = arith.constant 0 : index
    %7 = vector.load %arg1[%c0_11, %c0_12] : memref<300x16xf32, #tpu.memory_space<vmem>>, vector<300x16xf32>
    "tpu.trace_start"() <{level = 10 : i32, message = "pd,td->pt"}> : () -> ()
    %cst = arith.constant dense<0.000000e+00> : vector<128x300xf32>
    %8 = tpu.matmul %6, %7, %cst {dimension_numbers = #tpu.dot_dimension_numbers<[1], [1], [0], [0], [0, 0, 1, 0], [], []>} : vector<128x16xf32>, vector<300x16xf32>, vector<128x300xf32> -> vector<128x300xf32>
    "tpu.trace_stop"() : () -> ()
    %c0_13 = arith.constant 0 : index
    %c0_14 = arith.constant 0 : index
    %9 = vector.load %arg3[%c0_13, %c0_14] : memref<128x1xf32, #tpu.memory_space<vmem>>, vector<128x1xf32>
    %10 = vector.broadcast %9 : vector<128x1xf32> to vector<128x300xf32>
    %11 = arith.addf %8, %10 : vector<128x300xf32>
    %cst_15 = arith.constant 0.000000e+00 : f32
    %12 = vector.broadcast %cst_15 : f32 to vector<128x300xf32>
    %13 = arith.maximumf %11, %12 : vector<128x300xf32>
    %c0_16 = arith.constant 0 : index
    %c0_17 = arith.constant 0 : index
    %14 = vector.load %arg4[%c0_16, %c0_17] : memref<128x128xf32, #tpu.memory_space<vmem>>, vector<128x128xf32>
    %cst_18 = arith.constant dense<0.000000e+00> : vector<128x300xf32>
    %15 = tpu.matmul %14, %13, %cst_18 {dimension_numbers = #tpu.dot_dimension_numbers<[1], [0], [0], [1], [0, 0, 1, 1], [], []>} : vector<128x128xf32>, vector<128x300xf32>, vector<128x300xf32> -> vector<128x300xf32>
    %16 = arith.addf %15, %11 : vector<128x300xf32>
    %cst_19 = arith.constant 0.000000e+00 : f32
    %17 = vector.broadcast %cst_19 : f32 to vector<128x300xf32>
    %18 = arith.maximumf %16, %17 : vector<128x300xf32>
    %c0_20 = arith.constant 0 : index
    %c0_21 = arith.constant 0 : index
    %19 = vector.load %arg5[%c0_20, %c0_21] : memref<128x1xf32, #tpu.memory_space<vmem>>, vector<128x1xf32>
    %20 = vector.broadcast %19 : vector<128x1xf32> to vector<128x300xf32>
    %21 = arith.mulf %18, %20 : vector<128x300xf32>
    %c0_22 = arith.constant 0 : index
    %c0_23 = arith.constant 0 : index
    %22 = vector.load %arg6[%c0_22, %c0_23] : memref<128x1xf32, #tpu.memory_space<vmem>>, vector<128x1xf32>
    %23 = vector.broadcast %22 : vector<128x1xf32> to vector<128x300xf32>
    %24 = arith.mulf %11, %23 : vector<128x300xf32>
    %25 = arith.addf %21, %24 : vector<128x300xf32>
    %cst_24 = arith.constant dense<0.000000e+00> : vector<300xf32>
    %26 = vector.multi_reduction <add>, %25, %cst_24 [0] : vector<128x300xf32> to vector<300xf32>
    %27 = vector.shape_cast %26 : vector<300xf32> to vector<1x300xf32>
    %28 = tpu.iota {dimensions = array<i32: 0>} : vector<128x1xi32>
    %c65_i32 = arith.constant 65 : i32
    %29 = vector.broadcast %c65_i32 : i32 to vector<128x1xi32>
    %30 = arith.cmpi sge, %28, %29 : vector<128x1xi32>
    %c97_i32 = arith.constant 97 : i32
    %31 = vector.broadcast %c97_i32 : i32 to vector<128x1xi32>
    %32 = arith.cmpi slt, %28, %31 : vector<128x1xi32>
    %33 = arith.andi %30, %32 : vector<128x1xi1>
    %cst_25 = arith.constant -3.000000e+38 : f32
    %34 = vector.shape_cast %33 : vector<128x1xi1> to vector<128x1xi1>
    %35 = vector.broadcast %34 : vector<128x1xi1> to vector<128x300xi1>
    %36 = vector.broadcast %cst_25 : f32 to vector<128x300xf32>
    %37 = arith.select %35, %11, %36 : vector<128x300xi1>, vector<128x300xf32>
    %cst_26 = arith.constant dense<0xFF800000> : vector<300xf32>
    %38 = vector.multi_reduction <maximumf>, %37, %cst_26 [0] : vector<128x300xf32> to vector<300xf32>
    %39 = vector.shape_cast %38 : vector<300xf32> to vector<1x300xf32>
    %40 = vector.broadcast %0 : f32 to vector<1x300xf32>
    %41 = arith.mulf %40, %27 : vector<1x300xf32>
    %42 = vector.broadcast %1 : f32 to vector<1x300xf32>
    %43 = arith.mulf %42, %39 : vector<1x300xf32>
    %44 = arith.addf %41, %43 : vector<1x300xf32>
    %45 = vector.broadcast %2 : f32 to vector<1x300xf32>
    %46 = arith.mulf %45, %27 : vector<1x300xf32>
    %47 = vector.broadcast %3 : f32 to vector<1x300xf32>
    %48 = arith.mulf %47, %39 : vector<1x300xf32>
    %49 = arith.addf %46, %48 : vector<1x300xf32>
    %50 = arith.maximumf %44, %49 : vector<1x300xf32>
    %51 = vector.broadcast %4 : f32 to vector<1x300xf32>
    %52 = arith.mulf %51, %27 : vector<1x300xf32>
    %53 = vector.broadcast %5 : f32 to vector<1x300xf32>
    %54 = arith.mulf %53, %39 : vector<1x300xf32>
    %55 = arith.addf %52, %54 : vector<1x300xf32>
    %56 = arith.maximumf %50, %55 : vector<1x300xf32>
    %c0_27 = arith.constant 0 : index
    %c0_28 = arith.constant 0 : index
    %c0_29 = arith.constant 0 : index
    %57 = vector.load %arg8[%c0_27, %c0_28, %c0_29] : memref<1x1x300xf32, #tpu.memory_space<vmem>>, vector<1x1x300xf32>
    %58 = vector.shape_cast %57 : vector<1x1x300xf32> to vector<1x300xf32>
    %59 = vector.shape_cast %56 : vector<1x300xf32> to vector<1x1x300xf32>
    tpu.vector_store %arg8[%c0_27, %c0_28, %c0_29], %59 {strides = array<i32>} : memref<1x1x300xf32, #tpu.memory_space<vmem>>, vector<1x1x300xf32>,
    return
  }
  func.func @transform_0(%arg0: i32) -> (i32, i32) {
    %c0_i32 = arith.constant 0 : i32
    %c0_i32_0 = arith.constant 0 : i32
    return %arg0, %c0_i32 : i32, i32
  }
  func.func @transform_1(%arg0: i32) -> (i32, i32) {
    %c0_i32 = arith.constant 0 : i32
    %c0_i32_0 = arith.constant 0 : i32
    %c0_i32_1 = arith.constant 0 : i32
    return %c0_i32, %c0_i32_0 : i32, i32
  }
  func.func @transform_2(%arg0: i32) -> (i32, i32) {
    %c0_i32 = arith.constant 0 : i32
    %c0_i32_0 = arith.constant 0 : i32
    %c0_i32_1 = arith.constant 0 : i32
    return %c0_i32, %c0_i32_0 : i32, i32
  }
  func.func @transform_3(%arg0: i32) -> (i32, i32) {
    %c0_i32 = arith.constant 0 : i32
    %c0_i32_0 = arith.constant 0 : i32
    %c0_i32_1 = arith.constant 0 : i32
    return %c0_i32, %c0_i32_0 : i32, i32
  }
  func.func @transform_4(%arg0: i32) -> (i32, i32) {
    %c0_i32 = arith.constant 0 : i32
    %c0_i32_0 = arith.constant 0 : i32
    %c0_i32_1 = arith.constant 0 : i32
    return %c0_i32, %c0_i32_0 : i32, i32
  }
  func.func @transform_5(%arg0: i32) -> (i32, i32) {
    %c0_i32 = arith.constant 0 : i32
    %c0_i32_0 = arith.constant 0 : i32
    %c0_i32_1 = arith.constant 0 : i32
    return %c0_i32, %c0_i32_0 : i32, i32
  }
  func.func @transform_6(%arg0: i32) -> (i32, i32) {
    %c0_i32 = arith.constant 0 : i32
    %c0_i32_0 = arith.constant 0 : i32
    %c0_i32_1 = arith.constant 0 : i32
    return %c0_i32, %c0_i32_0 : i32, i32
  }
  func.func @transform_7(%arg0: i32) -> (i32, i32, i32) {
    %c0_i32 = arith.constant 0 : i32
    %c0_i32_0 = arith.constant 0 : i32
    %c0_i32_1 = arith.constant 0 : i32
    return %arg0, %c0_i32, %c0_i32_0 : i32, i32, i32
  }
}

</mosaic_0001>

<bundles_post_ra>
// kernel: tpu_custom_call.1
= control target key start
LH: loop header
LB: loop body
LE: loop exit
PB: predicated region body
PF: predicated region fallthrough
CT: control target
= control target key end

     0   :  { %12 = vsyncpa [#allocation4], 0  ;;  %s3619_s0 = inlined_call_operand.vmem [shape: f32[300,16], index: 0, kind: input, shape index: {}]   ;;  %s3620_s1 = inlined_call_operand.vmem [shape: f32[128,16], index: 1, kind: input, shape index: {}]   ;;  %s3621_s2 = inlined_call_operand.vmem [shape: f32[128,1], index: 2, kind: input, shape index: {}]   ;;  %s3622_s3 = inlined_call_operand.vmem [shape: f32[128,128], index: 3, kind: input, shape index: {}]   ;;  %s3623_s4 = inlined_call_operand.vmem [shape: f32[128,1], index: 4, kind: input, shape index: {}]   ;;  %s3624_s5 = inlined_call_operand.vmem [shape: f32[128,1], index: 5, kind: input, shape index: {}]   ;;  %s3625_s6 = inlined_call_operand.vmem [shape: f32[3,2], index: 6, kind: input, shape index: {}]   ;;  %s3626_s7 = inlined_call_operand.hbm [shape: f32[1,1,300], index: 7, kind: output, shape index: {}]  }
   0x1   :  { %13 = vsyncpa [#allocation3], 0  ;;  %s32_s26 = sshll.u32 %s3625_s6, 4  ;;  %s33_s26 = int_to_ptr.vmem [resolvable:$true] %s32_s26 }
   0x2   :  { %s2134_s27 = scalar_lea.vmem %s33_s26, 64  ;;  %p2139_p1 = scmp.lt.s32.totalorder %s33_s26, %s33_s26 }
   0x3   :  { %p2135_p0 = scmp.ne.s32.totalorder %s33_s26, %s2134_s27  ;;  %p2140_p2 = scmp.lt.s32.totalorder %s2134_s27, %s2134_s27 }
   0x5   :  { %p2141_p3 = por %p2140_p2, %p2139_p1 }
   0x7   :  { %p2142_p4 = pnand %p2141_p3, %p2135_p0 }
   0x9   :  { %2145 = shalt.err (!%p2142_p4)
}
   0xa   :  { %s2170_s28 = smov [#allocation2]  }
   0xb   :  { %35 = dma.vmem_to_smem %s33_s26, 64, %s2170_s28, [#allocation4]  }
   0xc   :  { %2166 = dma.done.wait [#allocation4], 64  }
   0xd   :  { %2167 = vsyncadd [#allocation4], 4294967232 }
   0xe   :  { %39 = sfence }
   0xf   :  { %v93_v0 = vld [vmem:[%s3619_s0 + $0xf8] sm:$0xff]  ;;  %vm196_vm0 = vcmask 130048   ;;  %v92_v2 = vld [vmem:[%s3619_s0 + $0xf0] sm:$0xff]  ;;  %v2171_v3 = vmov 0   ;;  %v91_v5 = vld [vmem:[%s3619_s0 + $0xe8] sm:$0xff]  ;;  %vm1461_vm1 = vcmask 359424  }
  0x10   :  { %v77_v1 = vld [vmem:[%s3619_s0 + $0x78] sm:$0xff]  ;;  %1884 = vmatprep.subr.msk.mxu0 %vm196_vm0, %v93_v0  ;;  %2132 = vset.pattern.permute.xlu0 %v2171_v3  ;;  %v76_v4 = vld [vmem:[%s3619_s0 + $0x70] sm:$0xff]  ;;  %v75_v6 = vld [vmem:[%s3619_s0 + $0x68] sm:$0xff]  ;;  %s40_s10 = sld [smem:[#allocation2]] }
  0x11   :  { %1885 = vmatpush3.xpose.msk.msra.mxu0 %vm196_vm0, %v77_v1  ;;  %2133 = vset.pattern.permute.xlu1 %v2171_v3  ;;  %v90_v7 = vld [vmem:[%s3619_s0 + $0xe0] sm:$0xff]  ;;  %v99_v10 = vld [vmem:[%s3619_s0 + $0x128] sm:$0xf]  ;;  %v89_v11 = vld [vmem:[%s3619_s0 + $0xd8] sm:$0xff]  ;;  %s1810_s11 = sld [smem:[#allocation2 + $0x80]] }
  0x12   :  { %1886 = vmatprep.subr.msk.mxu0 %vm196_vm0, %v92_v2  ;;  %v2249_v8 = vld [vmem:[%s3620_s1] sm:$0xff]  ;;  %2002 = vmatprep.subr.msk.mxu1 %vm196_vm0, %v99_v10  ;;  %v73_v13 = vld [vmem:[%s3619_s0 + $0x58] sm:$0xff]  ;;  %v88_v16 = vld [vmem:[%s3619_s0 + $0xd0] sm:$0xff]  ;;  %s1811_s12 = sld [smem:[#allocation2 + $0x81]] }
  0x13   :  { %v74_v9 = vld [vmem:[%s3619_s0 + $0x60] sm:$0xff]  ;;  %1916 = vmatprep.mubr.msk.f32.mxu0 %vm196_vm0, %v2249_v8  ;;  %2014 = vmatprep.mubr.msk.f32.mxu1 %vm196_vm0, %v2249_v8  ;;  %v97_v14 = vld [vmem:[%s3619_s0 + $0x118] sm:$0xff]  ;;  %v113_v17 = vld [vmem:[%s3621_s2 + $0x68] sm:$0xff]  ;;  %s1812_s13 = sld [smem:[#allocation2 + $0x100]] }
  0x14   :  { %v98_v12 = vld [vmem:[%s3619_s0 + $0x120] sm:$0xff]  ;;  %2003 = vmatpush3.xpose.msk.msra.mxu1 %vm196_vm0, %v99_v10  ;;  %v115_v15 = vld [vmem:[%s3621_s2 + $0x78] sm:$0xff]  ;;  %v114_v18 = vld [vmem:[%s3621_s2 + $0x70] sm:$0xff]  ;;  %183 = vperm.xlu1 %2133, %v113_v17   ;;  %s1813_s14 = sld [smem:[#allocation2 + $0x101]] }
  0x15   :  { %1887 = vmatpush3.xpose.msk.msra.mxu0 %vm196_vm0, %v76_v4  ;;  %2004 = vmatprep.subr.msk.mxu1 %vm196_vm0, %v98_v12  ;;  %v112_v19 = vld [vmem:[%s3621_s2 + $0x60] sm:$0xff]  ;;  %v72_v20 = vld [vmem:[%s3619_s0 + $0x50] sm:$0xff]  ;;  %v87_v22 = vld [vmem:[%s3619_s0 + $0xc8] sm:$0xff] }
  0x16   :  { %1888 = vmatprep.subr.msk.mxu0 %vm196_vm0, %v91_v5  ;;  %193 = vperm.xlu0 %2132, %v115_v15   ;;  %v96_v21 = vld [vmem:[%s3619_s0 + $0x110] sm:$0xff]  ;;  %v111_v23 = vld [vmem:[%s3621_s2 + $0x58] sm:$0xff]  ;;  %v71_v25 = vld [vmem:[%s3619_s0 + $0x48] sm:$0xff] }
  0x17   :  { %v110_v24 = vld [vmem:[%s3621_s2 + $0x50] sm:$0xff]  ;;  %v95_v26 = vld [vmem:[%s3619_s0 + $0x108] sm:$0xff]  ;;  %v86_v27 = vld [vmem:[%s3619_s0 + $0xc0] sm:$0xff] }
  0x18   :  { %2005 = vmatpush3.xpose.msk.msra.mxu1 %vm196_vm0, %v98_v12  ;;  %178 = vperm.xlu1 %2133, %v112_v19   ;;  %v109_v28 = vld [vmem:[%s3621_s2 + $0x48] sm:$0xff]  ;;  %v108_v29 = vld [vmem:[%s3621_s2 + $0x40] sm:$0xff]  ;;  %v85_v32 = vld [vmem:[%s3619_s0 + $0xb8] sm:$0xff] }
  0x19   :  { %1889 = vmatpush3.xpose.msk.msra.mxu0 %vm196_vm0, %v75_v6  ;;  %2006 = vmatprep.subr.msk.mxu1 %vm196_vm0, %v97_v14  ;;  %v70_v30 = vld [vmem:[%s3619_s0 + $0x40] sm:$0xff]  ;;  %v107_v33 = vld [vmem:[%s3621_s2 + $0x38] sm:$0xff]  ;;  %v106_v34 = vld [vmem:[%s3621_s2 + $0x30] sm:$0xff] }
  0x1a   :  { %1890 = vmatprep.subr.msk.mxu0 %vm196_vm0, %v90_v7  ;;  %188 = vperm.xlu0 %2132, %v114_v18   ;;  %v94_v31 = vld [vmem:[%s3619_s0 + $0x100] sm:$0xff]  ;;  %v69_v35 = vld [vmem:[%s3619_s0 + $0x38] sm:$0xff]  ;;  %v84_v36 = vld [vmem:[%s3619_s0 + $0xb0] sm:$0xff] }
  0x1b   :  { %v105_v37 = vld [vmem:[%s3621_s2 + $0x28] sm:$0xff]  ;;  %v104_v38 = vld [vmem:[%s3621_s2 + $0x20] sm:$0xff]  ;;  %v68_v39 = vld [vmem:[%s3619_s0 + $0x30] sm:$0xff] }
  0x1c   :  { %2007 = vmatpush3.xpose.msk.msra.mxu1 %vm196_vm0, %v97_v14  ;;  %168 = vperm.xlu1 %2133, %v110_v24   ;;  %v2376_v40 = vld [vmem:[%s3620_s1 + $0x8] sm:$0xff]  ;;  %v2384_v42 = vld [vmem:[%s3620_s1 + $0x10] sm:$0xff]  ;;  %v103_v43 = vld [vmem:[%s3621_s2 + $0x18] sm:$0xff] }
  0x1d   :  { %1891 = vmatpush3.xpose.msk.msra.mxu0 %vm196_vm0, %v74_v9  ;;  %2008 = vmatprep.subr.msk.mxu1 %vm196_vm0, %v96_v21  ;;  %v83_v41 = vld [vmem:[%s3619_s0 + $0xa8] sm:$0xff]  ;;  %v102_v44 = vld [vmem:[%s3621_s2 + $0x10] sm:$0xff]  ;;  %v2404_v46 = vld [vmem:[%s3620_s1 + $0x18] sm:$0xff] }
  0x1e   :  { %1892 = vmatprep.subr.msk.mxu0 %vm196_vm0, %v89_v11  ;;  %173 = vperm.xlu0 %2132, %v111_v23   ;;  %v67_v45 = vld [vmem:[%s3619_s0 + $0x28] sm:$0xff]  ;;  %v82_v47 = vld [vmem:[%s3619_s0 + $0xa0] sm:$0xff]  ;;  %v81_v53 = vld [vmem:[%s3619_s0 + $0x98] sm:$0xff] }
  0x1f   :  { %v2412_v48 = vld [vmem:[%s3620_s1 + $0x20] sm:$0xff]  ;;  %v101_v49 = vld [vmem:[%s3621_s2 + $0x8] sm:$0xff]  ;;  %v2440_v54 = vld [vmem:[%s3620_s1 + $0x30] sm:$0xff] }
  0x20   :  { %2009 = vmatpush3.xpose.msk.msra.mxu1 %vm196_vm0, %v96_v21  ;;  %158 = vperm.xlu1 %2133, %v108_v29   ;;  %v100_v50 = vld [vmem:[%s3621_s2] sm:$0xff]  ;;  %v2432_v52 = vld [vmem:[%s3620_s1 + $0x28] sm:$0xff]  ;;  %v65_v57 = vld [vmem:[%s3619_s0 + $0x18] sm:$0xff] }
  0x21   :  { %1893 = vmatpush3.xpose.msk.msra.mxu0 %vm196_vm0, %v73_v13  ;;  %2010 = vmatprep.subr.msk.mxu1 %vm196_vm0, %v95_v26  ;;  %v66_v51 = vld [vmem:[%s3619_s0 + $0x20] sm:$0xff]  ;;  %v1084_v56 = vld [vmem:[%s3623_s4 + $0x8] sm:$0xff]  ;;  %v2460_v58 = vld [vmem:[%s3620_s1 + $0x38] sm:$0xff] }
  0x22   :  { %1894 = vmatprep.subr.msk.mxu0 %vm196_vm0, %v88_v16  ;;  %163 = vperm.xlu0 %2132, %v109_v28   ;;  %v1083_v55 = vld [vmem:[%s3623_s4] sm:$0xff]  ;;  %v80_v59 = vld [vmem:[%s3619_s0 + $0x90] sm:$0xff]  ;;  %v1228_v62 = vld [vmem:[%s3624_s5 + $0x8] sm:$0xff] }
  0x23   :  { %v2468_v60 = vld [vmem:[%s3620_s1 + $0x40] sm:$0xff]  ;;  %v64_v63 = vld [vmem:[%s3619_s0 + $0x10] sm:$0xff]  ;;  %v2488_v0 = vld [vmem:[%s3620_s1 + $0x48] sm:$0xff] }
  0x24   :  { %2011 = vmatpush3.xpose.msk.msra.mxu1 %vm196_vm0, %v95_v26  ;;  %148 = vperm.xlu1 %2133, %v106_v34   ;;  %v1227_v61 = vld [vmem:[%s3624_s5] sm:$0xff]  ;;  %v79_v1 = vld [vmem:[%s3619_s0 + $0x88] sm:$0xff]  ;;  %v2496_v2 = vld [vmem:[%s3620_s1 + $0x50] sm:$0xff] }
  0x25   :  { %1895 = vmatpush3.xpose.msk.msra.mxu0 %vm196_vm0, %v72_v20  ;;  %2012 = vmatprep.subr.msk.mxu1 %vm196_vm0, %v94_v31  ;;  %v1085_v3 = vld [vmem:[%s3623_s4 + $0x10] sm:$0xff]  ;;  %v63_v5 = vld [vmem:[%s3619_s0 + $0x8] sm:$0xff]  ;;  %v2516_v6 = vld [vmem:[%s3620_s1 + $0x58] sm:$0xff] }
  0x26   :  { %1896 = vmatprep.subr.msk.mxu0 %vm196_vm0, %v87_v22  ;;  %153 = vperm.xlu0 %2132, %v107_v33   ;;  %v1229_v4 = vld [vmem:[%s3624_s5 + $0x10] sm:$0xff]  ;;  %v78_v7 = vld [vmem:[%s3619_s0 + $0x80] sm:$0xff]  ;;  %v1086_v10 = vld [vmem:[%s3623_s4 + $0x18] sm:$0xff] }
  0x27   :  { %v2524_v9 = vld [vmem:[%s3620_s1 + $0x60] sm:$0xff]  ;;  %v1230_v11 = vld [vmem:[%s3624_s5 + $0x18] sm:$0xff]  ;;  %v2544_v13 = vld [vmem:[%s3620_s1 + $0x68] sm:$0xff] }
  0x28   :  { %2013 = vmatpush3.xpose.msk.msra.mxu1 %vm196_vm0, %v94_v31  ;;  %138 = vperm.xlu1 %2133, %v104_v38   ;;  %v62_v12 = vld [vmem:[%s3619_s0] sm:$0xff]  ;;  %v2551_v14 = vld [vmem:[%s3620_s1 + $0x70] sm:$0xff]  ;;  %v2558_v15 = vld [vmem:[%s3620_s1 + $0x78] sm:$0xff]  ;;  %s2175_s0 = smov [#allocation5]  }
  0x29   :  { %1897 = vmatpush3.xpose.msk.msra.mxu0 %vm196_vm0, %v71_v25  ;;  %v1087_v16 = vld [vmem:[%s3623_s4 + $0x20] sm:$0xff]  ;;  %v1088_v18 = vld [vmem:[%s3623_s4 + $0x28] sm:$0xff]  ;;  %v1233_v20 = vld [vmem:[%s3624_s5 + $0x30] sm:$0xff]  ;;  %s1800_s15 = sshll.u32 %s2175_s0, 4  ;;  %s1801_s15 = int_to_ptr.vmem [resolvable:$true] %s1800_s15 }
  0x2a   :  { %1898 = vmatprep.subr.msk.mxu0 %vm196_vm0, %v86_v27  ;;  %143 = vperm.xlu0 %2132, %v105_v37   ;;  %v1231_v17 = vld [vmem:[%s3624_s5 + $0x20] sm:$0xff]  ;;  %v1232_v19 = vld [vmem:[%s3624_s5 + $0x28] sm:$0xff]  ;;  %v1090_v21 = vld [vmem:[%s3623_s4 + $0x38] sm:$0xff]  ;;  %s2146_s16 = scalar_lea.vmem %s1801_s15, 48  ;;  %s2150_s2 = scalar_lea.vmem %s1801_s15, 64 }
  0x2b   :  { %2015 = vmatmul.mubr.msk.f32.vlgmr.msra.gmra.mxu1 %vm196_vm0, %v2376_v40  ;;  %v1234_v22 = vld [vmem:[%s3624_s5 + $0x38] sm:$0xff]  ;;  %v1091_v23 = vld [vmem:[%s3623_s4 + $0x40] sm:$0xff]  ;;  %v1092_v25 = vld [vmem:[%s3623_s4 + $0x48] sm:$0xff]  ;;  %p2147_p5 = scmp.ne.s32.totalorder %s1801_s15, %s2146_s16  ;;  %p2151_p6 = scmp.lt.s32.totalorder %s1801_s15, %s1801_s15 }
  0x2c   :  { %2017 = vmatprep.mubr.msk.f32.mxu1 %vm196_vm0, %v2384_v42  ;;  %128 = vperm.xlu1 %2133, %v102_v44   ;;  %v1235_v24 = vld [vmem:[%s3624_s5 + $0x40] sm:$0xff]  ;;  %v1236_v26 = vld [vmem:[%s3624_s5 + $0x48] sm:$0xff]  ;;  %v1093_v27 = vld [vmem:[%s3623_s4 + $0x50] sm:$0xff]  ;;  %p2152_p7 = scmp.lt.s32.totalorder %s2150_s2, %s2146_s16 }
  0x2d   :  { %1899 = vmatpush3.xpose.msk.msra.mxu0 %vm196_vm0, %v70_v30  ;;  %v1237_v28 = vld [vmem:[%s3624_s5 + $0x50] sm:$0xff]  ;;  %v1094_v29 = vld [vmem:[%s3623_s4 + $0x58] sm:$0xff]  ;;  %v1095_v31 = vld [vmem:[%s3623_s4 + $0x60] sm:$0xff] }
  0x2e   :  { %1900 = vmatprep.subr.msk.mxu0 %vm196_vm0, %v85_v32  ;;  %133 = vperm.xlu0 %2132, %v103_v43   ;;  %v1238_v30 = vld [vmem:[%s3624_s5 + $0x58] sm:$0xff]  ;;  %v1239_v32 = vld [vmem:[%s3624_s5 + $0x60] sm:$0xff]  ;;  %v1096_v33 = vld [vmem:[%s3623_s4 + $0x68] sm:$0xff]  ;;  %p2153_p8 = por %p2152_p7, %p2151_p6 }
  0x2f   :  { %2018 = vmatmul.mubr.msk.f32.gmra.mxu1 %vm196_vm0, %v2404_v46  ;;  %v1240_v34 = vld [vmem:[%s3624_s5 + $0x68] sm:$0xff]  ;;  %v1098_v37 = vld [vmem:[%s3623_s4 + $0x78] sm:$0xff] }
  0x30   :  { %2020 = vmatprep.mubr.msk.f32.mxu1 %vm196_vm0, %v2412_v48  ;;  %118 = vperm.xlu1 %2133, %v100_v50   ;;  %v1242_v38 = vld [vmem:[%s3624_s5 + $0x78] sm:$0xff]  ;;  %p2154_p9 = pnand %p2153_p8, %p2147_p5 }
  0x31   :  { %1901 = vmatpush3.xpose.msk.msra.mxu0 %vm196_vm0, %v69_v35  ;;  %v1097_v35 = vld [vmem:[%s3623_s4 + $0x70] sm:$0xff] }
  0x32   :  { %1902 = vmatprep.subr.msk.mxu0 %vm196_vm0, %v84_v36  ;;  %123 = vperm.xlu0 %2132, %v101_v49   ;;  %v1241_v36 = vld [vmem:[%s3624_s5 + $0x70] sm:$0xff] }
  0x33   :  { %2021 = vmatmul.mubr.msk.f32.gmra.mxu1 %vm196_vm0, %v2432_v52 }
  0x34   :  { %2023 = vmatprep.mubr.msk.f32.mxu1 %vm196_vm0, %v2440_v54  ;;  %1106 = vperm.xlu1 %2133, %v1084_v56  }
  0x35   :  { %1903 = vmatpush3.xpose.msk.msra.mxu0 %vm196_vm0, %v68_v39  ;;  %v3627_v39 = vmov 0.0  }
  0x36   :  { %1904 = vmatprep.subr.msk.mxu0 %vm196_vm0, %v83_v41  ;;  %1101 = vperm.xlu0 %2132, %v1083_v55  }
  0x37   :  { %2024 = vmatmul.mubr.msk.f32.gmra.mxu1 %vm196_vm0, %v2460_v58 }
  0x38   :  { %2026 = vmatprep.mubr.msk.f32.mxu1 %vm196_vm0, %v2468_v60  ;;  %1250 = vperm.xlu1 %2133, %v1228_v62  }
  0x39   :  { %1905 = vmatpush3.xpose.msk.msra.mxu0 %vm196_vm0, %v67_v45 }
  0x3a   :  { %1906 = vmatprep.subr.msk.mxu0 %vm196_vm0, %v82_v47  ;;  %1245 = vperm.xlu0 %2132, %v1227_v61  }
  0x3b   :  { %2027 = vmatmul.mubr.msk.f32.gmra.mxu1 %vm196_vm0, %v2488_v0 }
  0x3c   :  { %2029 = vmatprep.mubr.msk.f32.mxu1 %vm196_vm0, %v2496_v2  ;;  %1255 = vperm.xlu1 %2133, %v1229_v4  }
  0x3d   :  { %1907 = vmatpush3.xpose.msk.msra.mxu0 %vm196_vm0, %v66_v51 }
  0x3e   :  { %1908 = vmatprep.subr.msk.mxu0 %vm196_vm0, %v81_v53  ;;  %1111 = vperm.xlu0 %2132, %v1085_v3  }
  0x3f   :  { %2030 = vmatmul.mubr.msk.f32.gmra.mxu1 %vm196_vm0, %v2516_v6 }
  0x40   :  { %2032 = vmatprep.mubr.msk.f32.mxu1 %vm196_vm0, %v2524_v9  ;;  %1260 = vperm.xlu1 %2133, %v1230_v11  }
  0x41   :  { %1909 = vmatpush3.xpose.msk.msra.mxu0 %vm196_vm0, %v65_v57 }
  0x42   :  { %1910 = vmatprep.subr.msk.mxu0 %vm196_vm0, %v80_v59  ;;  %1116 = vperm.xlu0 %2132, %v1086_v10  }
  0x43   :  { %2033 = vmatmul.mubr.msk.f32.gmra.mxu1 %vm196_vm0, %v2544_v13 }
  0x44   :  { %2035 = vmatprep.mubr.msk.f32.mxu1 %vm196_vm0, %v2551_v14  ;;  %1265 = vperm.xlu1 %2133, %v1231_v17  }
  0x45   :  { %1911 = vmatpush3.xpose.msk.msra.mxu0 %vm196_vm0, %v64_v63 }
  0x46   :  { %1912 = vmatprep.subr.msk.mxu0 %vm196_vm0, %v79_v1  ;;  %1121 = vperm.xlu0 %2132, %v1087_v16  }
  0x47   :  { %2036 = vmatmul.mubr.msk.f32.gmra.mxu1 %vm196_vm0, %v2558_v15 }
  0x48   :  { %1270 = vperm.xlu1 %2133, %v1232_v19   ;;  %811 = vmatprep.mubr.f32.mxu1 %v3627_v39 }
  0x49   :  { %1913 = vmatpush3.xpose.msk.msra.mxu0 %vm196_vm0, %v63_v5 }
  0x4a   :  { %1914 = vmatprep.subr.msk.mxu0 %vm196_vm0, %v78_v7  ;;  %1126 = vperm.xlu0 %2132, %v1088_v18  }
  0x4c   :  { %1275 = vperm.xlu1 %2133, %v1233_v20  }
  0x4d   :  { %1915 = vmatpush3.xpose.msk.msra.mxu0 %vm196_vm0, %v62_v12 }
  0x50   :  { %1917 = vmatmul.mubr.msk.f32.vlgmr.msra.gmra.mxu0 %vm196_vm0, %v2249_v8  ;;  %v1089_v8 = vld [vmem:[%s3623_s4 + $0x30] sm:$0xff]  ;;  %1280 = vperm.xlu1 %2133, %v1234_v22  }
  0x51   :  { %1918 = vmatprep.mubr.msk.f32.mxu0 %vm196_vm0, %v2376_v40  ;;  %1131 = vperm.xlu0 %2132, %v1089_v8  }
  0x54   :  { %1919 = vmatmul.mubr.msk.f32.gmra.mxu0 %vm196_vm0, %v2376_v40  ;;  %1285 = vperm.xlu1 %2133, %v1235_v24  }
  0x55   :  { %1920 = vmatprep.mubr.msk.f32.mxu0 %vm196_vm0, %v2384_v42  ;;  %1136 = vperm.xlu0 %2132, %v1090_v21  }
  0x58   :  { %1921 = vmatmul.mubr.msk.f32.gmra.mxu0 %vm196_vm0, %v2384_v42  ;;  %1290 = vperm.xlu1 %2133, %v1236_v26  }
  0x59   :  { %1922 = vmatprep.mubr.msk.f32.mxu0 %vm196_vm0, %v2404_v46  ;;  %1141 = vperm.xlu0 %2132, %v1091_v23  }
  0x5c   :  { %1923 = vmatmul.mubr.msk.f32.gmra.mxu0 %vm196_vm0, %v2404_v46  ;;  %1295 = vperm.xlu1 %2133, %v1237_v28  }
  0x5d   :  { %1924 = vmatprep.mubr.msk.f32.mxu0 %vm196_vm0, %v2412_v48  ;;  %1146 = vperm.xlu0 %2132, %v1092_v25  }
  0x60   :  { %1925 = vmatmul.mubr.msk.f32.gmra.mxu0 %vm196_vm0, %v2412_v48  ;;  %1300 = vperm.xlu1 %2133, %v1238_v30  }
  0x61   :  { %1926 = vmatprep.mubr.msk.f32.mxu0 %vm196_vm0, %v2432_v52  ;;  %1151 = vperm.xlu0 %2132, %v1093_v27  }
  0x64   :  { %1927 = vmatmul.mubr.msk.f32.gmra.mxu0 %vm196_vm0, %v2432_v52  ;;  %1305 = vperm.xlu1 %2133, %v1239_v32  }
  0x65   :  { %1928 = vmatprep.mubr.msk.f32.mxu0 %vm196_vm0, %v2440_v54  ;;  %1156 = vperm.xlu0 %2132, %v1094_v29  }
  0x68   :  { %1929 = vmatmul.mubr.msk.f32.gmra.mxu0 %vm196_vm0, %v2440_v54  ;;  %1310 = vperm.xlu1 %2133, %v1240_v34  }
  0x69   :  { %1930 = vmatprep.mubr.msk.f32.mxu0 %vm196_vm0, %v2460_v58  ;;  %1161 = vperm.xlu0 %2132, %v1095_v31  }
  0x6c   :  { %1931 = vmatmul.mubr.msk.f32.gmra.mxu0 %vm196_vm0, %v2460_v58  ;;  %1315 = vperm.xlu1 %2133, %v1241_v36  }
  0x6d   :  { %1932 = vmatprep.mubr.msk.f32.mxu0 %vm196_vm0, %v2468_v60  ;;  %1166 = vperm.xlu0 %2132, %v1096_v33  }
  0x70   :  { %1933 = vmatmul.mubr.msk.f32.gmra.mxu0 %vm196_vm0, %v2468_v60  ;;  %1320 = vperm.xlu1 %2133, %v1242_v38  }
  0x71   :  { %1934 = vmatprep.mubr.msk.f32.mxu0 %vm196_vm0, %v2488_v0  ;;  %1171 = vperm.xlu0 %2132, %v1097_v35  }
  0x74   :  { %1935 = vmatmul.mubr.msk.f32.gmra.mxu0 %vm196_vm0, %v2488_v0 }
  0x75   :  { %1936 = vmatprep.mubr.msk.f32.mxu0 %vm196_vm0, %v2496_v2  ;;  %1176 = vperm.xlu0 %2132, %v1098_v37  }
  0x78   :  { %1937 = vmatmul.mubr.msk.f32.gmra.mxu0 %vm196_vm0, %v2496_v2 }
  0x79   :  { %1938 = vmatprep.mubr.msk.f32.mxu0 %vm196_vm0, %v2516_v6 }
  0x7c   :  { %1939 = vmatmul.mubr.msk.f32.gmra.mxu0 %vm196_vm0, %v2516_v6 }
  0x7d   :  { %1940 = vmatprep.mubr.msk.f32.mxu0 %vm196_vm0, %v2524_v9 }
  0x80   :  { %1941 = vmatmul.mubr.msk.f32.gmra.mxu0 %vm196_vm0, %v2524_v9 }
  0x81   :  { %1942 = vmatprep.mubr.msk.f32.mxu0 %vm196_vm0, %v2544_v13 }
  0x84   :  { %1943 = vmatmul.mubr.msk.f32.gmra.mxu0 %vm196_vm0, %v2544_v13 }
  0x85   :  { %1944 = vmatprep.mubr.msk.f32.mxu0 %vm196_vm0, %v2551_v14 }
  0x88   :  { %1945 = vmatmul.mubr.msk.f32.gmra.mxu0 %vm196_vm0, %v2551_v14 }
  0x89   :  { %1946 = vmatprep.mubr.msk.f32.mxu0 %vm196_vm0, %v2558_v15 }
  0x8c   :  { %1947 = vmatmul.mubr.msk.f32.gmra.mxu0 %vm196_vm0, %v2558_v15 }
  0x8d   :  { %793 = vmatprep.mubr.f32.mxu0 %v3627_v39 }
  0x8f   :  { %v2749_v5 = vpop.permute.xlu1 %183 }
  0x91   :  { %v2747_v3 = vpop.permute.xlu0 %193 }
  0x93   :  { %v2757_v13 = vpop.permute.xlu1 %178 }
  0x95   :  { %v2753_v10 = vpop.permute.xlu0 %188 }
  0x97   :  { %v2763_v19 = vpop.permute.xlu1 %168 }
  0x99   :  { %v2761_v17 = vpop.permute.xlu0 %173 }
  0x9b   :  { %v2787_v30 = vpop.permute.xlu1 %158 }
  0x9d   :  { %v2776_v25 = vpop.permute.xlu0 %163 }
  0xeb   :  { %v2733_v57 = vpop.f32.mrf.mxu1 }
  0xed   :  { %v2739_v60 = vpop.f32.mrf.mxu1 }
  0xef   :  { %v2743_v63 = vpop.f32.mrf.mxu1 }
  0xf1   :  { %v2745_v2 = vpop.f32.mrf.mxu1 }
  0xf3   :  { %v2751_v7 = vpop.f32.mrf.mxu1 }
  0xf5   :  { %v2755_v12 = vpop.f32.mrf.mxu1 }
  0xf7   :  { %v2759_v16 = vpop.f32.mrf.mxu1 }
  0xf9   :  { %v2765_v20 = vpop.f32.mrf.mxu1 }
  0xfb   :  { %v2781_v27 = vpop.f32.mrf.mxu1 }
  0xfd   :  { %v2804_v38 = vpop.f32.mrf.mxu1 }
 0x110   :  { %v2699_v40 = vpop.f32.mrf.mxu0 }
 0x112   :  { %v2701_v41 = vpop.f32.mrf.mxu0 }
 0x114   :  { %v2703_v42 = vpop.f32.mrf.mxu0 }
 0x116   :  { %v2705_v43 = vpop.f32.mrf.mxu0 }
 0x118   :  { %v2707_v44 = vpop.f32.mrf.mxu0 }
 0x11a   :  { %v2709_v45 = vpop.f32.mrf.mxu0 }
 0x11c   :  { %v2711_v46 = vpop.f32.mrf.mxu0 }
 0x11e   :  { %v2713_v47 = vpop.f32.mrf.mxu0 }
 0x120   :  { %v2715_v48 = vpop.f32.mrf.mxu0 }
 0x122   :  { %v2717_v49 = vpop.f32.mrf.mxu0 }
 0x124   :  { %v2719_v50 = vpop.f32.mrf.mxu0 }
 0x126   :  { %v2721_v51 = vpop.f32.mrf.mxu0 }
 0x128   :  { %v2723_v52 = vpop.f32.mrf.mxu0 }
 0x12a   :  { %v2725_v53 = vpop.f32.mrf.mxu0 }
 0x12c   :  { %v2727_v54 = vpop.f32.mrf.mxu0 }
 0x12e   :  { %v2729_v55 = vpop.f32.mrf.mxu0 }
 0x130   :  { %v2731_v56 = vpop.f32.mrf.mxu0 }
 0x132   :  { %v2735_v58 = vpop.f32.mrf.mxu0 }
 0x134   :  { %v2737_v59 = vpop.f32.mrf.mxu0 }
 0x136   :  { %v2741_v61 = vpop.f32.mrf.mxu0 }
 0x138   :  { %v485_v62 = vpop.f32.mrf.mxu0 }
 0x13a   :  { %v487_v0 = vpop.f32.mrf.mxu0 }
 0x13c   :  { %v491_v1 = vpop.f32.mrf.mxu0 }
 0x13e   :  { %v493_v4 = vpop.f32.mrf.mxu0 }
 0x13f   :  { %v2802_v37 = vadd.f32 %v493_v4, %v2761_v17 }
 0x140   :  { %v497_v6 = vpop.f32.mrf.mxu0 }
 0x141   :  { %v2798_v35 = vadd.f32 %v497_v6, %v2757_v13  ;;  %3700 = vst [vmem:[#allocation16_spill] sm:$0xff] %v2802_v37 }
 0x142   :  { %v499_v9 = vpop.f32.mrf.mxu0 }
 0x143   :  { %v2794_v33 = vadd.f32 %v499_v9, %v2757_v13  ;;  %3699 = vst [vmem:[#allocation15_spill] sm:$0xff] %v2798_v35 }
 0x144   :  { %v503_v11 = vpop.f32.mrf.mxu0 }
 0x145   :  { %v2790_v31 = vadd.f32 %v503_v11, %v2749_v5  ;;  %3698 = vst [vmem:[#allocation14_spill] sm:$0xff] %v2794_v33  ;;  %v2807_v11 = vpop.permute.xlu0 %153  ;;  %v702_v4 = vmax.f32 %v2794_v33, 0.0 }
 0x146   :  { %v505_v14 = vpop.f32.mrf.mxu0 }
 0x147   :  { %v2784_v28 = vadd.f32 %v505_v14, %v2749_v5  ;;  %3697 = vst [vmem:[#allocation13_spill] sm:$0xff] %v2790_v31  ;;  %v2810_v14 = vadd.f32 %v491_v1, %v2761_v17  ;;  %v704_v6 = vmax.f32 %v2790_v31, 0.0  ;;  %v701_v1 = vmax.f32 %v2798_v35, 0.0 }
 0x148   :  { %v509_v15 = vpop.f32.mrf.mxu0 }
 0x149   :  { %v2779_v26 = vadd.f32 %v509_v15, %v2753_v10  ;;  %3696 = vst [vmem:[#allocation12_spill] sm:$0xff] %v2784_v28  ;;  %v705_v9 = vmax.f32 %v2784_v28, 0.0  ;;  %3701 = vst [vmem:[#allocation17_spill] sm:$0xff] %v2810_v14  ;;  %v2814_v15 = vadd.f32 %v487_v0, %v2763_v19  ;;  %v699_v0 = vmax.f32 %v2802_v37, 0.0 }
 0x14a   :  { %v511_v18 = vpop.f32.mrf.mxu0 }
 0x14b   :  { %v2771_v23 = vadd.f32 %v511_v18, %v2753_v10  ;;  %3695 = vst [vmem:[#allocation11_spill] sm:$0xff] %v2779_v26  ;;  %v707_v36 = vmax.f32 %v2779_v26, 0.0  ;;  %3702 = vst [vmem:[#allocation18_spill] sm:$0xff] %v2814_v15  ;;  %v2817_v18 = vpop.permute.xlu1 %148 }
 0x14c   :  { %v515_v8 = vpop.f32.mrf.mxu0 }
 0x14d   :  { %v2768_v21 = vadd.f32 %v515_v8, %v2747_v3  ;;  %3693 = vst [vmem:[#allocation9_spill] sm:$0xff] %v2771_v23  ;;  %v708_v34 = vmax.f32 %v2771_v23, 0.0  ;;  %v2820_v8 = vadd.f32 %v485_v62, %v2763_v19  ;;  %v698_v62 = vmax.f32 %v2810_v14, 0.0 }
 0x14e   :  { %v517_v22 = vpop.f32.mrf.mxu0 }
 0x14f   :  { %3692 = vst [vmem:[#allocation8_spill] sm:$0xff] %v2768_v21  ;;  %v2774_v24 = vadd.f32 %v517_v22, %v2747_v3  ;;  %v710_v32 = vmax.f32 %v2768_v21, 0.0  ;;  %3703 = vst [vmem:[#allocation19_spill] sm:$0xff] %v2820_v8  ;;  %v2825_v22 = vadd.f32 %v2741_v61, %v2776_v25  ;;  %v696_v61 = vmax.f32 %v2814_v15, 0.0 }
 0x151   :  { %3694 = vst [vmem:[#allocation10_spill] sm:$0xff] %v2774_v24  ;;  %v711_v29 = vmax.f32 %v2774_v24, 0.0  ;;  %3704 = vst [vmem:[#allocation20_spill] sm:$0xff] %v2825_v22 }
 0x153   :  { %729 = vmatprep.subr.mxu0 %v711_v29  ;;  %2094 = vmatprep.subr.mxu1 %v711_v29  ;;  %v2827_v29 = vpop.f32.mrf.mxu1 }
 0x154   :  { %730 = vmatpush1.msra.mxu0 %v710_v32  ;;  %2110 = vmatpush1.msra.mxu1 %v710_v32  ;;  %v2832_v32 = vadd.f32 %v2737_v59, %v2776_v25  ;;  %v695_v59 = vmax.f32 %v2820_v8, 0.0 }
 0x155   :  { %731 = vmatprep.subr.mxu0 %v708_v34  ;;  %2095 = vmatprep.subr.mxu1 %v708_v34  ;;  %v2837_v34 = vadd.f32 %v2735_v58, %v2787_v30  ;;  %v2851_v58 = vpop.f32.mrf.mxu1 }
 0x156   :  { %732 = vmatpush1.msra.mxu0 %v707_v36  ;;  %2111 = vmatpush1.msra.mxu1 %v707_v36  ;;  %3705 = vst [vmem:[#allocation21_spill] sm:$0xff] %v2832_v32  ;;  %v2840_v36 = vpop.permute.xlu0 %143 }
 0x157   :  { %733 = vmatprep.subr.mxu0 %v705_v9  ;;  %2096 = vmatprep.subr.mxu1 %v705_v9  ;;  %3706 = vst [vmem:[#allocation22_spill] sm:$0xff] %v2837_v34  ;;  %v2844_v9 = vadd.f32 %v2731_v56, %v2787_v30  ;;  %v2858_v56 = vadd.f32 %v2727_v54, %v2807_v11  ;;  %v2875_v39 = vpop.f32.mrf.mxu1 }
 0x158   :  { %734 = vmatpush1.msra.mxu0 %v704_v6  ;;  %2112 = vmatpush1.msra.mxu1 %v704_v6  ;;  %v2849_v6 = vadd.f32 %v2729_v55, %v2807_v11  ;;  %v2863_v55 = vadd.f32 %v2725_v53, %v2817_v18 }
 0x159   :  { %735 = vmatprep.subr.mxu0 %v702_v4  ;;  %2097 = vmatprep.subr.mxu1 %v702_v4  ;;  %v693_v4 = vmax.f32 %v2825_v22, 0.0  ;;  %v689_v54 = vmax.f32 %v2844_v9, 0.0 }
 0x15a   :  { %736 = vmatpush1.msra.mxu0 %v701_v1  ;;  %2113 = vmatpush1.msra.mxu1 %v701_v1  ;;  %v2854_v1 = vpop.permute.xlu1 %138  ;;  %v687_v53 = vmax.f32 %v2849_v6, 0.0 }
 0x15b   :  { %737 = vmatprep.subr.mxu0 %v699_v0  ;;  %2098 = vmatprep.subr.mxu1 %v699_v0  ;;  %v692_v0 = vmax.f32 %v2832_v32, 0.0  ;;  %v2894_v21 = vadd.f32 %v2715_v48, %v2854_v1 }
 0x15c   :  { %738 = vmatpush1.msra.mxu0 %v698_v62  ;;  %2114 = vmatpush1.msra.mxu1 %v698_v62  ;;  %v690_v62 = vmax.f32 %v2837_v34, 0.0 }
 0x15d   :  { %739 = vmatprep.subr.mxu0 %v696_v61  ;;  %2099 = vmatprep.subr.mxu1 %v696_v61  ;;  %v2868_v61 = vadd.f32 %v2723_v52, %v2817_v18  ;;  %v2882_v52 = vadd.f32 %v2719_v50, %v2840_v36 }
 0x15e   :  { %740 = vmatpush1.msra.mxu0 %v695_v59  ;;  %2115 = vmatpush1.msra.mxu1 %v695_v59  ;;  %v2873_v59 = vadd.f32 %v2721_v51, %v2840_v36  ;;  %v2887_v51 = vadd.f32 %v2717_v49, %v2854_v1  ;;  %v2890_v24 = vpop.permute.xlu1 %128  ;;  %v2901_v49 = vpop.f32.mrf.mxu1 }
 0x15f   :  { %741 = vmatprep.subr.mxu0 %v693_v4  ;;  %2100 = vmatprep.subr.mxu1 %v693_v4  ;;  %v2878_v4 = vpop.permute.xlu0 %133  ;;  %v683_v50 = vmax.f32 %v2868_v61, 0.0  ;;  %v680_v48 = vmax.f32 %v2882_v52, 0.0 }
 0x160   :  { %742 = vmatpush1.msra.mxu0 %v692_v0  ;;  %2116 = vmatpush1.msra.mxu1 %v692_v0  ;;  %v686_v0 = vmax.f32 %v2858_v56, 0.0  ;;  %v2906_v23 = vadd.f32 %v2711_v46, %v2878_v4  ;;  %v677_v46 = vmax.f32 %v2894_v21, 0.0 }
 0x161   :  { %743 = vmatprep.subr.mxu0 %v690_v62  ;;  %2101 = vmatprep.subr.mxu1 %v690_v62  ;;  %v684_v62 = vmax.f32 %v2863_v55, 0.0 }
 0x162   :  { %744 = vmatpush1.msra.mxu0 %v689_v54  ;;  %2117 = vmatpush1.msra.mxu1 %v689_v54  ;;  %v2899_v54 = vadd.f32 %v2713_v47, %v2878_v4  ;;  %v678_v47 = vmax.f32 %v2887_v51, 0.0  ;;  %v2926_v28 = vpop.permute.xlu1 %118 }
 0x163   :  { %745 = vmatprep.subr.mxu0 %v687_v53  ;;  %2102 = vmatprep.subr.mxu1 %v687_v53  ;;  %v681_v53 = vmax.f32 %v2873_v59, 0.0  ;;  %v2914_v26 = vpop.permute.xlu0 %123 }
 0x164   :  { %746 = vmatpush1.msra.mxu0 %v686_v0  ;;  %2118 = vmatpush1.msra.mxu1 %v686_v0  ;;  %v2911_v0 = vadd.f32 %v2709_v45, %v2890_v24  ;;  %v2037_v45 = vpop.f32.mrf.mxu1  ;;  %v2930_v31 = vadd.f32 %v2703_v42, %v2914_v26 }
 0x165   :  { %747 = vmatprep.subr.mxu0 %v684_v62  ;;  %2103 = vmatprep.subr.mxu1 %v684_v62  ;;  %v2918_v62 = vadd.f32 %v2707_v44, %v2890_v24  ;;  %v674_v44 = vmax.f32 %v2906_v23, 0.0  ;;  %v2946_v35 = vadd.f32 %v2037_v45, %v2747_v3  ;;  %v2961_v3 = vld [vmem:[%s3622_s3 + $0x18] sm:$0xff] }
 0x166   :  { %748 = vmatpush1.msra.mxu0 %v683_v50  ;;  %2119 = vmatpush1.msra.mxu1 %v683_v50  ;;  %v2923_v50 = vadd.f32 %v2705_v43, %v2914_v26  ;;  %v672_v43 = vmax.f32 %v2911_v0, 0.0  ;;  %v656_v42 = vpop.f32.mrf.mxu1 }
 0x167   :  { %749 = vmatprep.subr.mxu0 %v681_v53  ;;  %2104 = vmatprep.subr.mxu1 %v681_v53  ;;  %v675_v53 = vmax.f32 %v2899_v54, 0.0  ;;  %v671_v33 = vmax.f32 %v2918_v62, 0.0  ;;  %3707 = vst [vmem:[#allocation23_spill] sm:$0xff] %v2946_v35 }
 0x168   :  { %750 = vmatpush1.msra.mxu0 %v680_v48  ;;  %2120 = vmatpush1.msra.mxu1 %v680_v48  ;;  %v2935_v48 = vadd.f32 %v2701_v41, %v2926_v28  ;;  %v668_v41 = vmax.f32 %v2930_v31, 0.0 }
 0x169   :  { %751 = vmatprep.subr.mxu0 %v678_v47  ;;  %2105 = vmatprep.subr.mxu1 %v678_v47  ;;  %v2940_v47 = vadd.f32 %v2699_v40, %v2926_v28 }
 0x16a   :  { %752 = vmatpush1.msra.mxu0 %v677_v46  ;;  %2121 = vmatpush1.msra.mxu1 %v677_v46  ;;  %v669_v46 = vmax.f32 %v2923_v50, 0.0  ;;  %v666_v40 = vmax.f32 %v2935_v48, 0.0 }
 0x16b   :  { %753 = vmatprep.subr.mxu0 %v675_v53  ;;  %2106 = vmatprep.subr.mxu1 %v675_v53  ;;  %v665_v53 = vmax.f32 %v2940_v47, 0.0 }
 0x16c   :  { %754 = vmatpush1.msra.mxu0 %v674_v44  ;;  %2122 = vmatpush1.msra.mxu1 %v674_v44  ;;  %v2951_v44 = vadd.f32 %v656_v42, %v2753_v10  ;;  %v2968_v10 = vadd.f32 %v2875_v39, %v2749_v5  ;;  %v3710_v42 = vmov 0.0   ;;  %v2985_v39 = vadd.f32 %v2901_v49, %v2757_v13  ;;  %v2998_v13 = vld [vmem:[%s3622_s3 + $0x10] sm:$0xff]  ;;  %v3004_v49 = vld [vmem:[%s3622_s3 + $0x28] sm:$0xff] }
 0x16d   :  { %755 = vmatprep.subr.mxu0 %v672_v43  ;;  %2107 = vmatprep.subr.mxu1 %v672_v43  ;;  %v2956_v43 = vld [vmem:[%s3622_s3] sm:$0xff] }
 0x16e   :  { %756 = vmatpush1.msra.mxu0 %v671_v33  ;;  %2123 = vmatpush1.msra.mxu1 %v671_v33  ;;  %3708 = vst [vmem:[#allocation24_spill] sm:$0xff] %v2951_v44  ;;  %v712_v33 = vmax.f32 %v2946_v35, 0.0  ;;  %3709 = vst [vmem:[#allocation25_spill] sm:$0xff] %v2968_v10  ;;  %v709_v45 = vmax.f32 %v2951_v44, 0.0  ;;  %v706_v5 = vmax.f32 %v2968_v10, 0.0 }
 0x16f   :  { %757 = vmatprep.subr.mxu0 %v669_v46  ;;  %2108 = vmatprep.subr.mxu1 %v669_v46  ;;  %v2975_v46 = vld [vmem:[%s3622_s3 + $0x8] sm:$0xff]  ;;  %3711 = vst [vmem:[#allocation26_spill] sm:$0xff] %v2985_v39 }
 0x170   :  { %758 = vmatpush1.msra.mxu0 %v668_v41  ;;  %2124 = vmatpush1.msra.mxu1 %v668_v41  ;;  %v2981_v41 = vld [vmem:[%s3622_s3 + $0x20] sm:$0xff] }
 0x171   :  { %759 = vmatprep.subr.mxu0 %v666_v40  ;;  %2109 = vmatprep.subr.mxu1 %v666_v40  ;;  %v2991_v40 = vadd.f32 %v2827_v29, %v2761_v17  ;;  %v3008_v17 = vadd.f32 %v2851_v58, %v2763_v19  ;;  %v3023_v19 = vld [vmem:[%s3622_s3 + $0x30] sm:$0xff]  ;;  %v3027_v58 = vadd.f32 %v2759_v16, %v2807_v11  ;;  %v3040_v16 = vld [vmem:[%s3622_s3 + $0x38] sm:$0xff] }
 0x172   :  { %760 = vmatpush1.msra.mxu0 %v665_v53  ;;  %2125 = vmatpush1.msra.mxu1 %v665_v53  ;;  %v703_v53 = vmax.f32 %v2985_v39, 0.0 }
 0x173   :  { %794 = vmatmul.mubr.f32.vlgmr.msra.gmra.mxu0 %v2956_v43  ;;  %812 = vmatmul.mubr.f32.vlgmr.msra.gmra.mxu1 %v2961_v3  ;;  %3712 = vst [vmem:[#allocation27_spill] sm:$0xff] %v2991_v40  ;;  %3713 = vst [vmem:[#allocation28_spill] sm:$0xff] %v3008_v17  ;;  %v700_v29 = vmax.f32 %v2991_v40, 0.0  ;;  %v688_v11 = vmax.f32 %v3027_v58, 0.0  ;;  %v1706_v44 = vsel %vm1461_vm1, %v2991_v40, -inf  ;;  %v1704_v32 = vsel %vm1461_vm1, %v3008_v17, -inf }
 0x174   :  { %2038 = vmatprep.subr.mxu1 %v712_v33  ;;  %799 = vmatprep.mubr.f32.mxu0 %v3710_v42  ;;  %3715 = vst [vmem:[#allocation30_spill] sm:$0xff] %v3027_v58 }
 0x175   :  { %2039 = vmatpush3.msra.mxu1 %v712_v33  ;;  %817 = vmatprep.mubr.f32.mxu1 %v3710_v42  ;;  %v3015_v33 = vadd.f32 %v2781_v27, %v2776_v25  ;;  %v3031_v25 = vadd.f32 %v2804_v38, %v2787_v30  ;;  %v3044_v30 = vadd.f32 %v2751_v7, %v2840_v36  ;;  %v721_v7 = vld [vmem:[%s3622_s3 + $0x40] sm:$0xff] }
 0x176   :  { %2040 = vmatprep.subr.mxu1 %v709_v45  ;;  %v3048_v38 = vadd.f32 %v2765_v20, %v2817_v18  ;;  %v3059_v20 = vadd.f32 %v2743_v63, %v2878_v4  ;;  %v3063_v18 = vadd.f32 %v2755_v12, %v2854_v1  ;;  %v722_v63 = vld [vmem:[%s3622_s3 + $0x48] sm:$0xff]  ;;  %v3073_v4 = vadd.f32 %v2733_v57, %v2914_v26  ;;  %v723_v57 = vld [vmem:[%s3622_s3 + $0x50] sm:$0xff] }
 0x177   :  { %2041 = vmatpush3.msra.mxu1 %v709_v45  ;;  %800 = vmatmul.mubr.f32.gmra.mxu0 %v2975_v46  ;;  %3714 = vst [vmem:[#allocation29_spill] sm:$0xff] %v3015_v33  ;;  %v697_v45 = vmax.f32 %v3008_v17, 0.0  ;;  %3716 = vst [vmem:[#allocation31_spill] sm:$0xff] %v3031_v25  ;;  %v694_v27 = vmax.f32 %v3015_v33, 0.0  ;;  %v682_v36 = vmax.f32 %v3044_v30, 0.0  ;;  %v3077_v12 = vadd.f32 %v2745_v2, %v2890_v24 }
 0x178   :  { %818 = vmatmul.mubr.f32.gmra.mxu1 %v2981_v41  ;;  %2042 = vmatprep.subr.mxu1 %v706_v5  ;;  %3717 = vst [vmem:[#allocation32_spill] sm:$0xff] %v3044_v30  ;;  %3718 = vst [vmem:[#allocation33_spill] sm:$0xff] %v3048_v38  ;;  %v676_v1 = vmax.f32 %v3059_v20, 0.0  ;;  %v3087_v26 = vadd.f32 %v2739_v60, %v2926_v28  ;;  %v670_v2 = vmax.f32 %v3073_v4, 0.0  ;;  %v725_v60 = vld [vmem:[%s3622_s3 + $0x60] sm:$0xff]  ;;  %v726_v28 = vld [vmem:[%s3622_s3 + $0x68] sm:$0xff] }
 0x179   :  { %2043 = vmatpush3.msra.mxu1 %v706_v5  ;;  %805 = vmatprep.mubr.f32.mxu0 %v3710_v42  ;;  %v691_v5 = vmax.f32 %v3031_v25, 0.0  ;;  %3719 = vst [vmem:[#allocation34_spill] sm:$0xff] %v3059_v20  ;;  %3720 = vst [vmem:[#allocation35_spill] sm:$0xff] %v3063_v18 }
 0x17a   :  { %2044 = vmatprep.subr.mxu1 %v703_v53  ;;  %823 = vmatprep.mubr.f32.mxu1 %v3710_v42  ;;  %3721 = vst [vmem:[#allocation36_spill] sm:$0xff] %v3073_v4  ;;  %3722 = vst [vmem:[#allocation37_spill] sm:$0xff] %v3077_v12  ;;  %v667_v24 = vmax.f32 %v3087_v26, 0.0 }
 0x17b   :  { %2045 = vmatpush3.msra.mxu1 %v703_v53  ;;  %806 = vmatmul.mubr.f32.gmra.mxu0 %v2998_v13  ;;  %v685_v53 = vmax.f32 %v3048_v38, 0.0  ;;  %3723 = vst [vmem:[#allocation38_spill] sm:$0xff] %v3087_v26 }
 0x17c   :  { %824 = vmatmul.mubr.f32.gmra.mxu1 %v3004_v49  ;;  %2046 = vmatprep.subr.mxu1 %v700_v29 }
 0x17d   :  { %2047 = vmatpush3.msra.mxu1 %v700_v29  ;;  %829 = vmatprep.mubr.f32.mxu1 %v3710_v42  ;;  %v679_v29 = vmax.f32 %v3063_v18, 0.0 }
 0x17e   :  { %2048 = vmatprep.subr.mxu1 %v697_v45 }
 0x17f   :  { %2049 = vmatpush3.msra.mxu1 %v697_v45  ;;  %v673_v45 = vmax.f32 %v3077_v12, 0.0 }
 0x180   :  { %830 = vmatmul.mubr.f32.gmra.mxu1 %v3023_v19  ;;  %2050 = vmatprep.subr.mxu1 %v694_v27 }
 0x181   :  { %2051 = vmatpush3.msra.mxu1 %v694_v27  ;;  %835 = vmatprep.mubr.f32.mxu1 %v3710_v42  ;;  %v724_v27 = vld [vmem:[%s3622_s3 + $0x58] sm:$0xff] }
 0x182   :  { %2052 = vmatprep.subr.mxu1 %v691_v5 }
 0x183   :  { %2053 = vmatpush3.msra.mxu1 %v691_v5  ;;  %v727_v5 = vld [vmem:[%s3622_s3 + $0x70] sm:$0xff] }
 0x184   :  { %836 = vmatmul.mubr.f32.gmra.mxu1 %v3040_v16  ;;  %2054 = vmatprep.subr.mxu1 %v688_v11 }
 0x185   :  { %2055 = vmatpush3.msra.mxu1 %v688_v11  ;;  %841 = vmatprep.mubr.f32.mxu1 %v3710_v42  ;;  %v728_v11 = vld [vmem:[%s3622_s3 + $0x78] sm:$0xff]  ;;  %s3602_s3 = sld [smem:[#allocation2 + $0x1]] }
 0x186   :  { %2056 = vmatprep.subr.mxu1 %v685_v53 }
 0x187   :  { %2057 = vmatpush3.msra.mxu1 %v685_v53 }
 0x188   :  { %842 = vmatmul.mubr.f32.gmra.mxu1 %v721_v7  ;;  %2058 = vmatprep.subr.mxu1 %v682_v36 }
 0x189   :  { %2059 = vmatpush3.msra.mxu1 %v682_v36  ;;  %847 = vmatprep.mubr.f32.mxu1 %v3710_v42 }
 0x18a   :  { %2060 = vmatprep.subr.mxu1 %v679_v29 }
 0x18b   :  { %2061 = vmatpush3.msra.mxu1 %v679_v29 }
 0x18c   :  { %848 = vmatmul.mubr.f32.gmra.mxu1 %v722_v63  ;;  %2062 = vmatprep.subr.mxu1 %v676_v1 }
 0x18d   :  { %2063 = vmatpush3.msra.mxu1 %v676_v1  ;;  %853 = vmatprep.mubr.f32.mxu1 %v3710_v42 }
 0x18e   :  { %2064 = vmatprep.subr.mxu1 %v673_v45 }
 0x18f   :  { %2065 = vmatpush3.msra.mxu1 %v673_v45 }
 0x190   :  { %854 = vmatmul.mubr.f32.gmra.mxu1 %v723_v57  ;;  %2066 = vmatprep.subr.mxu1 %v670_v2 }
 0x191   :  { %2067 = vmatpush3.msra.mxu1 %v670_v2  ;;  %859 = vmatprep.mubr.f32.mxu1 %v3710_v42 }
 0x192   :  { %2068 = vmatprep.subr.mxu1 %v667_v24 }
 0x193   :  { %2069 = vmatpush3.msra.mxu1 %v667_v24 }
 0x194   :  { %860 = vmatmul.mubr.f32.gmra.mxu1 %v724_v27 }
 0x195   :  { %865 = vmatprep.mubr.f32.mxu1 %v3710_v42 }
 0x198   :  { %866 = vmatmul.mubr.f32.gmra.mxu1 %v725_v60 }
 0x199   :  { %871 = vmatprep.mubr.f32.mxu1 %v3710_v42 }
 0x19c   :  { %872 = vmatmul.mubr.f32.gmra.mxu1 %v726_v28 }
 0x19d   :  { %877 = vmatprep.mubr.f32.mxu1 %v3710_v42 }
 0x1a0   :  { %878 = vmatmul.mubr.f32.gmra.mxu1 %v727_v5 }
 0x1a1   :  { %883 = vmatprep.mubr.f32.mxu1 %v3710_v42 }
 0x1a4   :  { %884 = vmatmul.mubr.f32.gmra.mxu1 %v728_v11 }
 0x1a5   :  { %2070 = vmatprep.mubr.f32.mxu1 %v2956_v43  ;;  %v3119_v43 = vpop.permute.xlu1 %1106 }
 0x1a6   :  { %3724 = vst [vmem:[#allocation39_spill] sm:$0xff] %v3119_v43 }
 0x1a8   :  { %2071 = vmatmul.mubr.f32.vlgmr.msra.gmra.mxu1 %v2975_v46 }
 0x1a9   :  { %2073 = vmatprep.mubr.f32.mxu1 %v2998_v13  ;;  %v3121_v42 = vpop.permute.xlu1 %1250 }
 0x1ac   :  { %2074 = vmatmul.mubr.f32.gmra.mxu1 %v2961_v3 }
 0x1ad   :  { %2076 = vmatprep.mubr.f32.mxu1 %v2981_v41  ;;  %v3123_v3 = vpop.permute.xlu1 %1255 }
 0x1b0   :  { %2077 = vmatmul.mubr.f32.gmra.mxu1 %v3004_v49 }
 0x1b1   :  { %2079 = vmatprep.mubr.f32.mxu1 %v3023_v19  ;;  %v3125_v46 = vpop.permute.xlu1 %1260  ;;  %v3133_v19 = vpop.permute.xlu0 %1101 }
 0x1b2   :  { %3725 = vst [vmem:[#allocation40_spill] sm:$0xff] %v3133_v19 }
 0x1b4   :  { %2080 = vmatmul.mubr.f32.gmra.mxu1 %v3040_v16 }
 0x1b5   :  { %2082 = vmatprep.mubr.f32.mxu1 %v721_v7  ;;  %v3127_v41 = vpop.permute.xlu1 %1265  ;;  %v3137_v53 = vpop.permute.xlu0 %1245 }
 0x1b8   :  { %2083 = vmatmul.mubr.f32.gmra.mxu1 %v722_v63  ;;  %v3645_v63 = vlaneseq }
 0x1b9   :  { %2085 = vmatprep.mubr.f32.mxu1 %v723_v57  ;;  %v3129_v13 = vpop.permute.xlu1 %1270  ;;  %v3141_v36 = vpop.permute.xlu0 %1111 }
 0x1ba   :  { %3726 = vst [vmem:[#allocation41_spill] sm:$0xff] %v3141_v36  ;;  %v3148_v45 = vshrl.u32 %v3645_v63, 7  ;;  %v3205_v36 = vmul.f32 %v3125_v46, %v3059_v20  ;;  %v3758_v20 = vld [vmem:[#allocation21_spill] sm:$0xff] }
 0x1bc   :  { %2086 = vmatmul.mubr.f32.gmra.mxu1 %v724_v27  ;;  %3728 = vst [vmem:[#allocation43_spill] sm:$0xff] %v3148_v45  ;;  %v3153_v2 = vadd.s32 64, %v3148_v45  ;;  %v2173_v27 = vmov -inf   ;;  %3735 = vst [vmem:[#allocation50_spill] sm:$0xff] %v3205_v36 }
 0x1bd   :  { %2088 = vmatprep.mubr.f32.mxu1 %v725_v60  ;;  %v3131_v49 = vpop.permute.xlu1 %1275  ;;  %v3145_v1 = vpop.permute.xlu0 %1116  ;;  %v3158_v60 = vsel %vm1461_vm1, -3e+38, %v2173_v27  ;;  %v3174_v27 = vadd.s32 96, %v3148_v45 }
 0x1be   :  { %3727 = vst [vmem:[#allocation42_spill] sm:$0xff] %v3145_v1  ;;  %3730 = vst [vmem:[#allocation45_spill] sm:$0xff] %v3158_v60  ;;  %vm1524_vm2 = vcmp.ge.s32.totalorder %v3153_v2, 65  ;;  %v3227_v36 = vmul.f32 %v3131_v49, %v3048_v38 }
 0x1bf   :  { %3732 = vst [vmem:[#allocation47_spill] sm:$0xff] %v3174_v27  ;;  %vm1544_vm3 = vcmp.lt.s32.totalorder %v3174_v27, 97  ;;  %v3209_v27 = vmul.f32 %v3123_v3, %v3077_v12 }
 0x1c0   :  { %2089 = vmatmul.mubr.f32.gmra.mxu1 %v726_v28  ;;  %v1702_v28 = vsel %vm1461_vm1, %v3015_v33, -inf  ;;  %3741 = vst [vmem:[#allocation56_spill] sm:$0xff] %v3227_v36 }
 0x1c1   :  { %2091 = vmatprep.mubr.f32.mxu1 %v727_v5  ;;  %v3135_v16 = vpop.permute.xlu1 %1280  ;;  %v3155_v24 = vpop.permute.xlu0 %1121  ;;  %v1703_v63 = vmax.f32 %v3158_v60, %v1702_v28  ;;  %3736 = vst [vmem:[#allocation51_spill] sm:$0xff] %v3209_v27 }
 0x1c2   :  { %3729 = vst [vmem:[#allocation44_spill] sm:$0xff] %v3155_v24 }
 0x1c3   :  { %v1707_v8 = vmax.f32 %v1703_v63, %v1706_v44  ;;  %v3192_v44 = vmul.f32 %v3121_v42, %v3073_v4  ;;  %v3196_v63 = vmul.f32 %v3137_v53, %v3087_v26  ;;  %v3223_v4 = vmul.f32 %v3135_v16, %v3027_v58  ;;  %v3755_v58 = vld [vmem:[#allocation22_spill] sm:$0xff] }
 0x1c4   :  { %2092 = vmatmul.mubr.f32.gmra.mxu1 %v728_v11  ;;  %v1622_v11 = vsel %vm1524_vm2, %v3031_v25, -3e+38 }
 0x1c5   :  { %v3139_v7 = vpop.permute.xlu1 %1285  ;;  %v3171_v35 = vpop.permute.xlu0 %1126  ;;  %v1700_v15 = vsel %vm1461_vm1, %v1622_v11, -inf  ;;  %v1634_v11 = vsel %vm1544_vm3, %v2985_v39, -3e+38  ;;  %3733 = vst [vmem:[#allocation48_spill] sm:$0xff] %v3192_v44  ;;  %3734 = vst [vmem:[#allocation49_spill] sm:$0xff] %v3196_v63  ;;  %v3213_v44 = vmul.f32 %v3129_v13, %v3044_v30 }
 0x1c6   :  { %3731 = vst [vmem:[#allocation46_spill] sm:$0xff] %v3171_v35  ;;  %v1701_v28 = vmax.f32 %v3158_v60, %v1700_v15  ;;  %v1711_v15 = vmax.f32 %v1707_v8, %v3158_v60  ;;  %v3219_v8 = vmul.f32 %v3127_v41, %v3063_v18  ;;  %3740 = vst [vmem:[#allocation55_spill] sm:$0xff] %v3223_v4  ;;  %v3232_v30 = vsel %vm1461_vm1, %v1634_v11, -inf }
 0x1c7   :  { %3737 = vst [vmem:[#allocation52_spill] sm:$0xff] %v3213_v44  ;;  %3742 = vst [vmem:[#allocation57_spill] sm:$0xff] %v3232_v30  ;;  %v3243_v4 = vmul.f32 %v3139_v7, %v3031_v25  ;;  %v3333_v30 = vmul.f32 %v3135_v16, %v2858_v56  ;;  %v1621_v18 = vsel %vm1524_vm2, %v3755_v58, -3e+38 }
 0x1c8   :  { %v3215_v63 = vmax.f32 %v1701_v28, %v1704_v32  ;;  %3739 = vst [vmem:[#allocation54_spill] sm:$0xff] %v3219_v8  ;;  %v3250_v11 = vmax.f32 %v1711_v15, %v3158_v60 }
 0x1c9   :  { %v3143_v29 = vpop.permute.xlu1 %1290  ;;  %v3201_v34 = vpop.permute.xlu0 %1131  ;;  %3744 = vst [vmem:[#allocation59_spill] sm:$0xff] %v3243_v4  ;;  %3751 = vst [vmem:[#allocation66_spill] sm:$0xff] %v3333_v30 }
 0x1ca   :  { %3738 = vst [vmem:[#allocation53_spill] sm:$0xff] %v3215_v63  ;;  %v3239_v8 = vmul.f32 %v3143_v29, %v3015_v33  ;;  %3746 = vst [vmem:[#allocation61_spill] sm:$0xff] %v3250_v11  ;;  %v1620_v33 = vsel %vm1524_vm2, %v2844_v9, -3e+38  ;;  %v3754_v63 = vld [vmem:[#allocation41_spill] sm:$0xff] }
 0x1cc   :  { %3743 = vst [vmem:[#allocation58_spill] sm:$0xff] %v3239_v8 }
 0x1cd   :  { %v3150_v57 = vpop.permute.xlu1 %1295 }
 0x1ce   :  { %v3260_v8 = vmul.f32 %v3150_v57, %v3008_v17 }
 0x1d0   :  { %3748 = vst [vmem:[#allocation63_spill] sm:$0xff] %v3260_v8  ;;  %v1324_v8 = vmul.f32 %v3137_v53, %v2935_v48 }
 0x1d1   :  { %v3162_v5 = vpop.permute.xlu1 %1300 }
 0x1d2   :  { %v3247_v36 = vmul.f32 %v3162_v5, %v2991_v40 }
 0x1d4   :  { %3745 = vst [vmem:[#allocation60_spill] sm:$0xff] %v3247_v36 }
 0x1d5   :  { %v3179_v1 = vpop.permute.xlu1 %1305 }
 0x1d6   :  { %v3264_v4 = vmul.f32 %v3179_v1, %v2985_v39  ;;  %v1326_v39 = vmul.f32 %v3121_v42, %v2930_v31 }
 0x1d8   :  { %3749 = vst [vmem:[#allocation64_spill] sm:$0xff] %v3264_v4 }
 0x1d9   :  { %v3234_v44 = vpop.permute.xlu1 %1310 }
 0x1da   :  { %v3254_v38 = vmul.f32 %v3234_v44, %v2968_v10  ;;  %v1323_v10 = vmul.f32 %v3137_v53, %v2940_v47  ;;  %v1330_v53 = vmul.f32 %v3123_v3, %v2911_v0 }
 0x1dc   :  { %3747 = vst [vmem:[#allocation62_spill] sm:$0xff] %v3254_v38 }
 0x233   :  { %v795_v24 = vpop.f32.mrf.mxu0  ;;  %v3177_v37 = vpop.f32.mrf.mxu1 }
 0x234   :  { %v796_v40 = vadd.f32 %v795_v24, %v2940_v47  ;;  %v1327_v24 = vmul.f32 %v3121_v42, %v2923_v50  ;;  %v814_v25 = vadd.f32 %v3177_v37, %v2906_v23 }
 0x235   :  { %v797_v14 = vpop.f32.mrf.mxu0  ;;  %v3181_v22 = vpop.f32.mrf.mxu1 }
 0x236   :  { %v798_v38 = vadd.f32 %v797_v14, %v2935_v48  ;;  %v3305_v14 = vmul.f32 %v3127_v41, %v2887_v51  ;;  %v1035_v48 = vmax.f32 %v796_v40, 0.0  ;;  %v816_v37 = vadd.f32 %v3181_v22, %v2899_v54 }
 0x237   :  { %v801_v45 = vpop.f32.mrf.mxu0  ;;  %v1044_v12 = vmax.f32 %v814_v25, 0.0  ;;  %v3368_v25 = vmul.f32 %v3143_v29, %v3758_v20 }
 0x238   :  { %v3199_v35 = vpop.f32.mrf.mxu1  ;;  %v802_v32 = vadd.f32 %v801_v45, %v2930_v31  ;;  %v3291_v31 = vmul.f32 %v3125_v46, %v2906_v23  ;;  %v1036_v40 = vmax.f32 %v798_v38, 0.0  ;;  %v3337_v23 = vmul.f32 %v3135_v16, %v2849_v6 }
 0x239   :  { %v803_v26 = vpop.f32.mrf.mxu0  ;;  %v3353_v16 = vmul.f32 %v3139_v7, %v2844_v9  ;;  %3759 = vst [vmem:[#allocation21_spill] sm:$0xff] %v3368_v25 }
 0x23a   :  { %v3229_v27 = vpop.f32.mrf.mxu1  ;;  %v804_v36 = vadd.f32 %v803_v26, %v2923_v50  ;;  %v1329_v26 = vmul.f32 %v3123_v3, %v2918_v62  ;;  %v1038_v17 = vmax.f32 %v802_v32, 0.0  ;;  %v3295_v50 = vmul.f32 %v3125_v46, %v2899_v54  ;;  %3752 = vst [vmem:[#allocation67_spill] sm:$0xff] %v3337_v23 }
 0x23b   :  { %v807_v28 = vpop.f32.mrf.mxu0  ;;  %v3309_v32 = vmul.f32 %v3129_v13, %v2882_v52  ;;  %v3313_v46 = vmul.f32 %v3129_v13, %v2873_v59  ;;  %v3329_v13 = vmul.f32 %v3131_v49, %v2863_v55  ;;  %3756 = vst [vmem:[#allocation22_spill] sm:$0xff] %v3353_v16  ;;  %v3359_v54 = vmul.f32 %v3139_v7, %v3755_v58 }
 0x23c   :  { %v3256_v45 = vpop.f32.mrf.mxu1  ;;  %v808_v15 = vadd.f32 %v807_v28, %v2918_v62  ;;  %v3283_v28 = vpop.permute.xlu0 %1136  ;;  %v3299_v62 = vmul.f32 %v3127_v41, %v2894_v21  ;;  %v1651_v23 = vmax.f32 %v3758_v20, -3e+38  ;;  %v1045_v16 = vmax.f32 %v816_v37, 0.0 }
 0x23d   :  { %v809_v11 = vpop.f32.mrf.mxu0  ;;  %3750 = vst [vmem:[#allocation65_spill] sm:$0xff] %v3329_v13  ;;  %3757 = vst [vmem:[#allocation69_spill] sm:$0xff] %v3359_v54 }
 0x23e   :  { %v3279_v4 = vpop.f32.mrf.mxu1  ;;  %v810_v47 = vadd.f32 %v809_v11, %v2911_v0  ;;  %v1039_v0 = vmax.f32 %v804_v36, 0.0  ;;  %v1041_v3 = vmax.f32 %v808_v15, 0.0  ;;  %v3317_v11 = vmul.f32 %v3131_v49, %v2868_v61 }
 0x23f   :  { %v1182_v36 = vmul.f32 %v3119_v43, %v1038_v17 }
 0x240   :  { %v3301_v42 = vpop.f32.mrf.mxu1  ;;  %v1042_v15 = vmax.f32 %v810_v47, 0.0  ;;  %v3343_v38 = vpop.permute.xlu0 %1141  ;;  %v1179_v47 = vmul.f32 %v3133_v19, %v1035_v48  ;;  %v1183_v49 = vmul.f32 %v3119_v43, %v1039_v0  ;;  %v1185_v60 = vmul.f32 %v3754_v63, %v1041_v3 }
 0x241   :  { %3753 = vst [vmem:[#allocation68_spill] sm:$0xff] %v3343_v38  ;;  %v1650_v48 = vmax.f32 %v1620_v33, -3e+38  ;;  %v1180_v0 = vmul.f32 %v3133_v19, %v1036_v40  ;;  %v1374_v43 = vadd.f32 %v1326_v39, %v1182_v36  ;;  %v820_v3 = vadd.f32 %v3199_v35, %v2894_v21  ;;  %v3760_v40 = vld [vmem:[#allocation20_spill] sm:$0xff]  ;;  %v3761_v21 = vld [vmem:[#allocation17_spill] sm:$0xff] }
 0x242   :  { %v3321_v41 = vpop.f32.mrf.mxu1  ;;  %v1186_v2 = vmul.f32 %v3754_v63, %v1042_v15  ;;  %v1671_v38 = vmax.f32 %v1621_v18, -3e+38  ;;  %v1371_v7 = vadd.f32 %v1323_v10, %v1179_v47  ;;  %v1375_v54 = vadd.f32 %v1327_v24, %v1183_v49  ;;  %v3762_v15 = vld [vmem:[#allocation42_spill] sm:$0xff]  ;;  %v3763_v47 = vld [vmem:[#allocation19_spill] sm:$0xff] }
 0x243   :  { %v822_v33 = vadd.f32 %v3229_v27, %v2887_v51  ;;  %v1377_v39 = vadd.f32 %v1329_v26, %v1185_v60  ;;  %v1672_v36 = vmax.f32 %v3760_v40, -3e+38  ;;  %v1653_v35 = vmax.f32 %v1651_v23, %v3761_v21  ;;  %v3765_v23 = vld [vmem:[#allocation16_spill] sm:$0xff] }
 0x244   :  { %v3341_v17 = vpop.f32.mrf.mxu1  ;;  %v1188_v63 = vmul.f32 %v3762_v15, %v1044_v12  ;;  %v826_v19 = vadd.f32 %v3256_v45, %v2882_v52  ;;  %v3377_v25 = vpop.permute.xlu0 %1146  ;;  %v1372_v37 = vadd.f32 %v1324_v8, %v1180_v0  ;;  %v1419_v18 = vadd.f32 %v1374_v43, %v1371_v7 }
 0x245   :  { %v1047_v10 = vmax.f32 %v820_v3, 0.0  ;;  %v1378_v24 = vadd.f32 %v1330_v53, %v1186_v2  ;;  %v3381_v51 = vmul.f32 %v3150_v57, %v3763_v47  ;;  %v828_v60 = vadd.f32 %v3279_v4, %v2873_v59 }
 0x246   :  { %v3355_v22 = vpop.f32.mrf.mxu1  ;;  %v3387_v12 = vmul.f32 %v3143_v29, %v3760_v40  ;;  %v3390_v52 = vmax.f32 %v1650_v48, %v3763_v47  ;;  %v1189_v8 = vmul.f32 %v3762_v15, %v1045_v16  ;;  %v1440_v43 = vadd.f32 %v1375_v54, %v1372_v37  ;;  %v3766_v29 = vld [vmem:[#allocation44_spill] sm:$0xff]  ;;  %v3767_v48 = vld [vmem:[#allocation18_spill] sm:$0xff] }
 0x247   :  { %3764 = vst [vmem:[#allocation20_spill] sm:$0xff] %v3381_v51  ;;  %v1048_v45 = vmax.f32 %v822_v33, 0.0  ;;  %v1420_v26 = vadd.f32 %v1419_v18, %v1377_v39  ;;  %v1655_v53 = vmax.f32 %v1653_v35, -3e+38  ;;  %v1674_v49 = vmax.f32 %v1672_v36, %v3765_v23  ;;  %v3768_v37 = vld [vmem:[#allocation46_spill] sm:$0xff] }
 0x248   :  { %v843_v30 = vpop.f32.mrf.mxu1  ;;  %v1050_v0 = vmax.f32 %v826_v19, 0.0  ;;  %v832_v59 = vadd.f32 %v3301_v42, %v2868_v61  ;;  %v1380_v3 = vadd.f32 %v3291_v31, %v1188_v63  ;;  %v1191_v2 = vmul.f32 %v3766_v29, %v1047_v10  ;;  %v3409_v42 = vpop.permute.xlu0 %1151 }
 0x249   :  { %v1441_v7 = vadd.f32 %v1440_v43, %v1378_v24  ;;  %v3400_v51 = vmul.f32 %v3150_v57, %v3767_v48  ;;  %v3404_v16 = vmul.f32 %v3162_v5, %v3761_v21  ;;  %v1051_v54 = vmax.f32 %v828_v60, 0.0  ;;  %v3769_v24 = vld [vmem:[#allocation15_spill] sm:$0xff] }
 0x24a   :  { %v845_v13 = vpop.f32.mrf.mxu1  ;;  %v834_v19 = vadd.f32 %v3321_v41, %v2863_v55  ;;  %v1673_v61 = vmax.f32 %v1671_v38, %v3767_v48  ;;  %v1381_v63 = vadd.f32 %v3295_v50, %v1189_v8  ;;  %v1192_v31 = vmul.f32 %v3766_v29, %v1048_v45 }
 0x24b   :  { %v1421_v39 = vadd.f32 %v1420_v26, %v1380_v3  ;;  %v3415_v57 = vmul.f32 %v3162_v5, %v3765_v23  ;;  %v3417_v36 = vmax.f32 %v1655_v53, -3e+38  ;;  %v1676_v35 = vmax.f32 %v1674_v49, -3e+38  ;;  %v3771_v53 = vld [vmem:[#allocation14_spill] sm:$0xff] }
 0x24c   :  { %v849_v27 = vpop.f32.mrf.mxu1  ;;  %v1194_v18 = vmul.f32 %v3768_v37, %v1050_v0  ;;  %v1053_v55 = vmax.f32 %v832_v59, 0.0  ;;  %v1383_v38 = vadd.f32 %v3299_v62, %v1191_v2  ;;  %v1442_v10 = vadd.f32 %v1441_v7, %v1381_v63 }
 0x24d   :  { %v838_v50 = vadd.f32 %v3341_v17, %v2858_v56  ;;  %v1632_v8 = vsel %vm1544_vm3, %v3769_v24, -3e+38  ;;  %v3428_v5 = vmul.f32 %v3179_v1, %v3769_v24  ;;  %v1195_v43 = vmul.f32 %v3768_v37, %v1051_v54 }
 0x24e   :  { %v851_v4 = vpop.f32.mrf.mxu1  ;;  %v1054_v45 = vmax.f32 %v834_v19, 0.0  ;;  %v1633_v62 = vsel %vm1544_vm3, %v3771_v53, -3e+38  ;;  %v1384_v49 = vadd.f32 %v3305_v14, %v1192_v31  ;;  %v1422_v0 = vadd.f32 %v1421_v39, %v1383_v38  ;;  %v3441_v19 = vpop.permute.xlu0 %1156 }
 0x24f   :  { %v840_v56 = vadd.f32 %v3355_v22, %v2849_v6  ;;  %v844_v17 = vadd.f32 %v843_v30, %v2844_v9  ;;  %v1678_v59 = vmax.f32 %v1676_v35, -3e+38  ;;  %v1386_v3 = vadd.f32 %v3309_v32, %v1194_v18  ;;  %v3460_v38 = vpop.permute.xlu1 %1315 }
 0x250   :  { %v855_v33 = vpop.f32.mrf.mxu1  ;;  %v1197_v2 = vmul.f32 %v3201_v34, %v1053_v55  ;;  %v1654_v54 = vmax.f32 %v3390_v52, %v1632_v8  ;;  %v1443_v63 = vadd.f32 %v1442_v10, %v1384_v49  ;;  %v1056_v60 = vmax.f32 %v838_v50, 0.0  ;;  %v3772_v55 = vld [vmem:[#allocation13_spill] sm:$0xff]  ;;  %v3773_v8 = vld [vmem:[#allocation12_spill] sm:$0xff] }
 0x251   :  { %v846_v14 = vadd.f32 %v845_v13, %v3755_v58  ;;  %v850_v31 = vadd.f32 %v849_v27, %v3758_v20  ;;  %v1387_v6 = vadd.f32 %v3313_v46, %v1195_v43  ;;  %v1198_v9 = vmul.f32 %v3201_v34, %v1054_v45 }
 0x252   :  { %v857_v41 = vpop.f32.mrf.mxu1  ;;  %v3449_v32 = vmul.f32 %v3179_v1, %v3771_v53  ;;  %v1675_v22 = vmax.f32 %v1673_v61, %v1633_v62  ;;  %v1423_v39 = vadd.f32 %v1422_v0, %v1386_v3  ;;  %v1057_v52 = vmax.f32 %v840_v56, 0.0  ;;  %v3775_v0 = vld [vmem:[#allocation68_spill] sm:$0xff]  ;;  %v3776_v3 = vld [vmem:[#allocation11_spill] sm:$0xff] }
 0x253   :  { %v1059_v35 = vmax.f32 %v844_v17, 0.0  ;;  %v852_v18 = vadd.f32 %v851_v4, %v3760_v40  ;;  %v3454_v58 = vmul.f32 %v3234_v44, %v3772_v55  ;;  %v1389_v20 = vadd.f32 %v3317_v11, %v1197_v2  ;;  %v3774_v4 = vld [vmem:[#allocation65_spill] sm:$0xff] }
 0x254   :  { %v861_v26 = vpop.f32.mrf.mxu1  ;;  %v856_v46 = vadd.f32 %v855_v33, %v3763_v47  ;;  %v3458_v27 = vmax.f32 %v1654_v54, -3e+38  ;;  %v1444_v1 = vadd.f32 %v1443_v63, %v1387_v6  ;;  %v1200_v61 = vmul.f32 %v3283_v28, %v1056_v60  ;;  %v3469_v33 = vpop.permute.xlu0 %1161  ;;  %v3777_v60 = vld [vmem:[#allocation66_spill] sm:$0xff] }
 0x255   :  { %v1060_v10 = vmax.f32 %v846_v14, 0.0  ;;  %v1062_v50 = vmax.f32 %v850_v31, 0.0  ;;  %v3465_v40 = vmul.f32 %v3234_v44, %v3773_v8  ;;  %v1390_v43 = vadd.f32 %v3774_v4, %v1198_v9  ;;  %v3781_v4 = vld [vmem:[#allocation21_spill] sm:$0xff] }
 0x256   :  { %v863_v7 = vpop.f32.mrf.mxu1  ;;  %v858_v11 = vadd.f32 %v857_v41, %v3767_v48  ;;  %v1677_v47 = vmax.f32 %v1675_v22, -3e+38  ;;  %v1424_v62 = vadd.f32 %v1423_v39, %v1389_v20  ;;  %v1201_v49 = vmul.f32 %v3283_v28, %v1057_v52 }
 0x257   :  { %v1203_v56 = vmul.f32 %v3775_v0, %v1059_v35  ;;  %v1063_v17 = vmax.f32 %v852_v18, 0.0  ;;  %v3475_v2 = vmul.f32 %v3460_v38, %v3776_v3  ;;  %v1065_v44 = vmax.f32 %v856_v46, 0.0  ;;  %v3489_v46 = vpop.permute.xlu1 %1320 }
 0x258   :  { %v867_v30 = vpop.f32.mrf.mxu1  ;;  %v862_v54 = vadd.f32 %v861_v26, %v3761_v21  ;;  %v864_v63 = vadd.f32 %v863_v7, %v3765_v23  ;;  %v1445_v41 = vadd.f32 %v1444_v1, %v1390_v43  ;;  %v1392_v14 = vadd.f32 %v3777_v60, %v1200_v61  ;;  %v3778_v21 = vld [vmem:[#allocation67_spill] sm:$0xff]  ;;  %v3779_v23 = vld [vmem:[#allocation22_spill] sm:$0xff]  ;;  %v3784_v60 = vld [vmem:[#allocation20_spill] sm:$0xff] }
 0x259   :  { %v1204_v31 = vmul.f32 %v3775_v0, %v1060_v10  ;;  %v1206_v6 = vmul.f32 %v3377_v25, %v1062_v50  ;;  %v1066_v9 = vmax.f32 %v858_v11, 0.0  ;;  %v868_v22 = vadd.f32 %v867_v30, %v3769_v24 }
 0x25a   :  { %v869_v13 = vpop.f32.mrf.mxu1  ;;  %v3484_v35 = vmax.f32 %v1677_v47, %v1678_v59  ;;  %v1425_v18 = vadd.f32 %v1424_v62, %v1392_v14  ;;  %v1393_v26 = vadd.f32 %v3778_v21, %v1201_v49  ;;  %v1395_v7 = vadd.f32 %v3779_v23, %v1203_v56  ;;  %v3782_v47 = vld [vmem:[#allocation9_spill] sm:$0xff]  ;;  %v3785_v23 = vld [vmem:[#allocation10_spill] sm:$0xff] }
 0x25b   :  { %v870_v39 = vadd.f32 %v869_v13, %v3771_v53  ;;  %v1207_v20 = vmul.f32 %v3377_v25, %v1063_v17  ;;  %v1209_v1 = vmul.f32 %v3409_v42, %v1065_v44  ;;  %v1068_v61 = vmax.f32 %v862_v54, 0.0  ;;  %v3493_v53 = vpop.permute.xlu0 %1166  ;;  %v3780_v13 = vld [vmem:[#allocation69_spill] sm:$0xff]  ;;  %v3783_v54 = vld [vmem:[#allocation8_spill] sm:$0xff] }
 0x25c   :  { %v873_v45 = vpop.f32.mrf.mxu1  ;;  %v1069_v10 = vmax.f32 %v864_v63, 0.0  ;;  %v1446_v59 = vadd.f32 %v1445_v41, %v1393_v26  ;;  %v1396_v50 = vadd.f32 %v3780_v13, %v1204_v31  ;;  %v1398_v43 = vadd.f32 %v3781_v4, %v1206_v6 }
 0x25d   :  { %v874_v24 = vadd.f32 %v873_v45, %v3772_v55  ;;  %v1366_v62 = vmul.f32 %v3460_v38, %v3782_v47  ;;  %v1210_v49 = vmul.f32 %v3409_v42, %v1066_v9  ;;  %v1071_v56 = vmax.f32 %v868_v22, 0.0 }
 0x25e   :  { %v875_v48 = vpop.f32.mrf.mxu1  ;;  %v1072_v17 = vmax.f32 %v870_v39, 0.0  ;;  %v3503_v55 = vmul.f32 %v3489_v46, %v3783_v54  ;;  %v1426_v45 = vadd.f32 %v1425_v18, %v1395_v7  ;;  %v1399_v63 = vadd.f32 %v3387_v12, %v1207_v20 }
 0x25f   :  { %v876_v11 = vadd.f32 %v875_v48, %v3773_v8  ;;  %v1401_v14 = vadd.f32 %v3784_v60, %v1209_v1  ;;  %v1212_v8 = vmul.f32 %v3441_v19, %v1068_v61  ;;  %v1213_v48 = vmul.f32 %v3441_v19, %v1069_v10  ;;  %v3515_v1 = vpop.permute.xlu0 %1171 }
 0x260   :  { %v879_v52 = vpop.f32.mrf.mxu1  ;;  %v1074_v31 = vmax.f32 %v874_v24, 0.0  ;;  %v1447_v9 = vadd.f32 %v1446_v59, %v1396_v50  ;;  %v1427_v22 = vadd.f32 %v1426_v45, %v1398_v43  ;;  %v1402_v26 = vadd.f32 %v3400_v51, %v1210_v49 }
 0x261   :  { %v1075_v39 = vmax.f32 %v876_v11, 0.0  ;;  %v880_v21 = vadd.f32 %v879_v52, %v3776_v3  ;;  %v1215_v18 = vmul.f32 %v3469_v33, %v1071_v56  ;;  %v1216_v12 = vmul.f32 %v3469_v33, %v1072_v17 }
 0x262   :  { %v881_v30 = vpop.f32.mrf.mxu1  ;;  %v1448_v61 = vadd.f32 %v1447_v9, %v1399_v63  ;;  %v1428_v13 = vadd.f32 %v1427_v22, %v1401_v14  ;;  %v1404_v3 = vadd.f32 %v3404_v16, %v1212_v8  ;;  %v1405_v51 = vadd.f32 %v3415_v57, %v1213_v48 }
 0x263   :  { %v882_v41 = vadd.f32 %v881_v30, %v3782_v47  ;;  %v3786_v30 = vld [vmem:[#allocation36_spill] sm:$0xff]  ;;  %v1218_v52 = vmul.f32 %v3493_v53, %v1074_v31  ;;  %v1219_v4 = vmul.f32 %v3493_v53, %v1075_v39  ;;  %v1077_v43 = vmax.f32 %v880_v21, 0.0  ;;  %v3787_v47 = vld [vmem:[#allocation38_spill] sm:$0xff]  ;;  %v3789_v31 = vld [vmem:[#allocation39_spill] sm:$0xff]  ;;  %v3530_v22 = vpop.permute.xlu0 %1176 }
 0x264   :  { %v885_v44 = vpop.f32.mrf.mxu1  ;;  %v1449_v56 = vadd.f32 %v1448_v61, %v1402_v26  ;;  %v1407_v17 = vadd.f32 %v3428_v5, %v1215_v18  ;;  %v1429_v14 = vadd.f32 %v1428_v13, %v1404_v3  ;;  %v3790_v39 = vld [vmem:[#allocation40_spill] sm:$0xff]  ;;  %v1369_v18 = vmul.f32 %v3489_v46, %v3785_v23 }
 0x265   :  { %v1078_v10 = vmax.f32 %v882_v41, 0.0  ;;  %v886_v24 = vadd.f32 %v885_v44, %v3783_v54  ;;  %v1408_v44 = vadd.f32 %v3449_v32, %v1216_v12  ;;  %v3788_v41 = vld [vmem:[#allocation34_spill] sm:$0xff]  ;;  %v1410_v48 = vadd.f32 %v3454_v58, %v1218_v52  ;;  %v3793_v13 = vld [vmem:[#allocation48_spill] sm:$0xff] }
 0x266   :  { %v887_v6 = vpop.f32.mrf.mxu1  ;;  %v1450_v8 = vadd.f32 %v1449_v56, %v1405_v51  ;;  %v1411_v5 = vadd.f32 %v3465_v40, %v1219_v4  ;;  %v1221_v32 = vmul.f32 %v3515_v1, %v1077_v43  ;;  %v1430_v12 = vadd.f32 %v1429_v14, %v1407_v17 }
 0x267   :  { %v888_v7 = vadd.f32 %v887_v6, %v3785_v23  ;;  %v1222_v16 = vmul.f32 %v3515_v1, %v1078_v10  ;;  %v1080_v63 = vmax.f32 %v886_v24, 0.0 }
 0x268   :  { %v2072_v20 = vpop.f32.mrf.mxu1  ;;  %v1451_v10 = vadd.f32 %v1450_v8, %v1408_v44  ;;  %v1431_v43 = vadd.f32 %v1430_v12, %v1410_v48  ;;  %v3796_v44 = vld [vmem:[#allocation41_spill] sm:$0xff]  ;;  %v3798_v8 = vld [vmem:[#allocation50_spill] sm:$0xff] }
 0x269   :  { %v962_v59 = vadd.f32 %v2072_v20, %v3786_v30  ;;  %v1081_v54 = vmax.f32 %v888_v7, 0.0  ;;  %v3791_v20 = vld [vmem:[#allocation37_spill] sm:$0xff]  ;;  %v1414_v24 = vadd.f32 %v1366_v62, %v1222_v16  ;;  %v1224_v30 = vmul.f32 %v3530_v22, %v1080_v63 }
 0x26a   :  { %v956_v50 = vpop.f32.mrf.mxu1 }
 0x26b   :  { %v1040_v11 = vmax.f32 %v962_v59, 0.0  ;;  %v957_v49 = vadd.f32 %v956_v50, %v3787_v47  ;;  %v1225_v7 = vmul.f32 %v3530_v22, %v1081_v54  ;;  %v3792_v59 = vld [vmem:[#allocation49_spill] sm:$0xff]  ;;  %v3794_v50 = vld [vmem:[#allocation32_spill] sm:$0xff]  ;;  %v1413_v47 = vadd.f32 %v3475_v2, %v1221_v32  ;;  %v3799_v2 = vld [vmem:[#allocation51_spill] sm:$0xff] }
 0x26c   :  { %v2075_v45 = vpop.f32.mrf.mxu1 }
 0x26d   :  { %v1037_v57 = vmax.f32 %v957_v49, 0.0  ;;  %v972_v60 = vadd.f32 %v2075_v45, %v3788_v41  ;;  %v1184_v6 = vmul.f32 %v3789_v31, %v1040_v11  ;;  %v1452_v11 = vadd.f32 %v1451_v10, %v1411_v5  ;;  %v3795_v49 = vld [vmem:[#allocation35_spill] sm:$0xff]  ;;  %v3797_v41 = vld [vmem:[#allocation30_spill] sm:$0xff] }
 0x26e   :  { %v966_v9 = vpop.f32.mrf.mxu1  ;;  %v1417_v17 = vadd.f32 %v1369_v18, %v1225_v7  ;;  %v1658_v7 = vmax.f32 %v3458_v27, %v3417_v36 }
 0x26f   :  { %v1181_v21 = vmul.f32 %v3790_v39, %v1037_v57  ;;  %v1046_v26 = vmax.f32 %v972_v60, 0.0  ;;  %v967_v58 = vadd.f32 %v966_v9, %v3791_v20  ;;  %v1376_v3 = vadd.f32 %v3793_v13, %v1184_v6  ;;  %v3801_v20 = vld [vmem:[#allocation45_spill] sm:$0xff] }
 0x270   :  { %v2078_v61 = vpop.f32.mrf.mxu1  ;;  %v1453_v63 = vadd.f32 %v1452_v11, %v1414_v24 }
 0x271   :  { %v1373_v40 = vadd.f32 %v3792_v59, %v1181_v21  ;;  %v1190_v51 = vmul.f32 %v3762_v15, %v1046_v26  ;;  %v1043_v52 = vmax.f32 %v967_v58, 0.0  ;;  %v982_v4 = vadd.f32 %v2078_v61, %v3794_v50  ;;  %v3800_v21 = vld [vmem:[#allocation33_spill] sm:$0xff]  ;;  %v3805_v59 = vld [vmem:[#allocation52_spill] sm:$0xff] }
 0x272   :  { %v976_v23 = vpop.f32.mrf.mxu1  ;;  %v1416_v15 = vadd.f32 %v3503_v55, %v1224_v30  ;;  %v1463_v14 = vsel %vm1461_vm1, %v1376_v3, 0.0  ;;  %v1454_v18 = vadd.f32 %v1453_v63, %v1417_v17  ;;  %v3802_v58 = vld [vmem:[#allocation53_spill] sm:$0xff]  ;;  %v3808_v17 = vld [vmem:[#allocation31_spill] sm:$0xff]  ;;  %v1659_v63 = vrot.slane %v1658_v7, 4 }
 0x273   :  { %v977_v56 = vadd.f32 %v976_v23, %v3795_v49  ;;  %v1462_v62 = vsel %vm1461_vm1, %v1373_v40, 0.0  ;;  %v1187_v54 = vmul.f32 %v3796_v44, %v1043_v52  ;;  %v1052_v45 = vmax.f32 %v982_v4, 0.0  ;;  %v3803_v61 = vld [vmem:[#allocation57_spill] sm:$0xff] }
 0x274   :  { %v2081_v16 = vpop.f32.mrf.mxu1  ;;  %v1382_v48 = vadd.f32 %v3798_v8, %v1190_v51  ;;  %v1464_v5 = vadd.f32 %v1463_v14, %v1462_v62  ;;  %v3804_v10 = vmax.f32 %v3802_v58, %v3803_v61  ;;  %v3807_v50 = vld [vmem:[#allocation29_spill] sm:$0xff]  ;;  %v1680_v49 = vrot.slane %v3484_v35, 4 }
 0x275   :  { %v1049_v57 = vmax.f32 %v977_v56, 0.0  ;;  %v992_v60 = vadd.f32 %v2081_v16, %v3797_v41  ;;  %v1379_v31 = vadd.f32 %v3799_v2, %v1187_v54  ;;  %v1196_v6 = vmul.f32 %v3768_v37, %v1052_v45  ;;  %v3809_v45 = vld [vmem:[#allocation27_spill] sm:$0xff]  ;;  %v3811_v41 = vld [vmem:[#allocation56_spill] sm:$0xff] }
 0x276   :  { %v986_v9 = vpop.f32.mrf.mxu1  ;;  %v1713_v24 = vmax.f32 %v3804_v10, %v3801_v20  ;;  %v1432_v37 = vadd.f32 %v1431_v43, %v1413_v47  ;;  %v1467_v3 = vsel %vm1461_vm1, %v1382_v48, 0.0  ;;  %v1455_v43 = vrot.slane %v1454_v18, 4 }
 0x277   :  { %v1193_v32 = vmul.f32 %v3766_v29, %v1049_v57  ;;  %v1058_v39 = vmax.f32 %v992_v60, 0.0  ;;  %v987_v26 = vadd.f32 %v986_v9, %v3800_v21  ;;  %v1465_v55 = vsel %vm1461_vm1, %v1379_v31, 0.0  ;;  %v3806_v29 = vld [vmem:[#allocation54_spill] sm:$0xff]  ;;  %v3810_v57 = vld [vmem:[#allocation55_spill] sm:$0xff] }
 0x278   :  { %v2084_v12 = vpop.f32.mrf.mxu1  ;;  %v1466_v30 = vadd.f32 %v1465_v55, %v1464_v5  ;;  %v1388_v40 = vadd.f32 %v3805_v59, %v1196_v6  ;;  %v1433_v36 = vadd.f32 %v1432_v37, %v1416_v15  ;;  %v3812_v6 = vld [vmem:[#allocation28_spill] sm:$0xff]  ;;  %v1456_v5 = vadd.f32 %v1455_v43, %v1454_v18  ;;  %v3815_v37 = vld [vmem:[#allocation59_spill] sm:$0xff] }
 0x279   :  { %v1385_v13 = vadd.f32 %v3806_v29, %v1193_v32  ;;  %v1202_v51 = vmul.f32 %v3283_v28, %v1058_v39  ;;  %v1055_v52 = vmax.f32 %v987_v26, 0.0  ;;  %v1002_v4 = vadd.f32 %v2084_v12, %v3807_v50  ;;  %v3813_v12 = vld [vmem:[#allocation58_spill] sm:$0xff] }
 0x27a   :  { %v996_v23 = vpop.f32.mrf.mxu1  ;;  %v1468_v27 = vadd.f32 %v1467_v3, %v1466_v30  ;;  %v1471_v54 = vsel %vm1461_vm1, %v1388_v40, 0.0  ;;  %v1434_v2 = vrot.slane %v1433_v36, 4  ;;  %v1681_v26 = vmax.f32 %v3484_v35, %v1680_v49  ;;  %v3816_v40 = vld [vmem:[#allocation61_spill] sm:$0xff] }
 0x27b   :  { %v1469_v11 = vsel %vm1461_vm1, %v1385_v13, 0.0  ;;  %v1199_v47 = vmul.f32 %v3201_v34, %v1055_v52  ;;  %v1064_v56 = vmax.f32 %v1002_v4, 0.0  ;;  %v997_v62 = vadd.f32 %v996_v23, %v3808_v17  ;;  %v3817_v52 = vld [vmem:[#allocation26_spill] sm:$0xff] }
 0x27c   :  { %v2087_v44 = vpop.f32.mrf.mxu1  ;;  %v1470_v28 = vadd.f32 %v1469_v11, %v1468_v27  ;;  %v1394_v15 = vadd.f32 %v3810_v57, %v1202_v51  ;;  %v1716_v29 = vmax.f32 %v1713_v24, %v3816_v40  ;;  %v1435_v13 = vadd.f32 %v1434_v2, %v1433_v36  ;;  %v3822_v2 = vld [vmem:[#allocation62_spill] sm:$0xff] }
 0x27d   :  { %v1012_v16 = vadd.f32 %v2087_v44, %v3809_v45  ;;  %v1391_v60 = vadd.f32 %v3811_v41, %v1199_v47  ;;  %v1208_v14 = vmul.f32 %v3377_v25, %v1064_v56  ;;  %v1061_v8 = vmax.f32 %v997_v62, 0.0  ;;  %v3814_v25 = vld [vmem:[#allocation25_spill] sm:$0xff]  ;;  %v3819_v56 = vld [vmem:[#allocation60_spill] sm:$0xff] }
 0x27e   :  { %v1006_v48 = vpop.f32.mrf.mxu1  ;;  %v1472_v34 = vadd.f32 %v1471_v54, %v1470_v28  ;;  %v1475_v10 = vsel %vm1461_vm1, %v1394_v15, 0.0  ;;  %v1660_v23 = vmax.f32 %v1658_v7, %v1659_v63  ;;  %v1682_v27 = vrot.slane %v1681_v26, 2  ;;  %v3821_v7 = vld [vmem:[#allocation24_spill] sm:$0xff] }
 0x27f   :  { %v1070_v31 = vmax.f32 %v1012_v16, 0.0  ;;  %v1007_v9 = vadd.f32 %v1006_v48, %v3812_v6  ;;  %v1473_v32 = vsel %vm1461_vm1, %v1391_v60, 0.0  ;;  %v1205_v39 = vmul.f32 %v3775_v0, %v1061_v8 }
 0x280   :  { %v2090_v21 = vpop.f32.mrf.mxu1  ;;  %v1474_v55 = vadd.f32 %v1473_v32, %v1472_v34  ;;  %v1400_v20 = vadd.f32 %v3813_v12, %v1208_v14  ;;  %v1457_v11 = vrot.slane %v1456_v5, 2  ;;  %v1436_v54 = vrot.slane %v1435_v13, 2 }
 0x281   :  { %v1067_v58 = vmax.f32 %v1007_v9, 0.0  ;;  %v1022_v61 = vadd.f32 %v2090_v21, %v3814_v25  ;;  %v1397_v30 = vadd.f32 %v3815_v37, %v1205_v39  ;;  %v1214_v59 = vmul.f32 %v3441_v19, %v1070_v31  ;;  %v3818_v19 = vld [vmem:[#allocation63_spill] sm:$0xff]  ;;  %v3823_v31 = vld [vmem:[#allocation64_spill] sm:$0xff] }
 0x282   :  { %v1016_v18 = vpop.f32.mrf.mxu1  ;;  %v1476_v0 = vadd.f32 %v1475_v10, %v1474_v55  ;;  %v1479_v49 = vsel %vm1461_vm1, %v1400_v20, 0.0  ;;  %v1661_v15 = vrot.slane %v1660_v23, 2  ;;  %v1717_v41 = vrot.slane %v1716_v29, 4 }
 0x283   :  { %v1211_v3 = vmul.f32 %v3409_v42, %v1067_v58  ;;  %v1076_v35 = vmax.f32 %v1022_v61, 0.0  ;;  %v1477_v51 = vsel %vm1461_vm1, %v1397_v30, 0.0  ;;  %v1017_v50 = vadd.f32 %v1016_v18, %v3817_v52  ;;  %v3820_v42 = vld [vmem:[#allocation23_spill] sm:$0xff] }
 0x284   :  { %v2093_v4 = vpop.f32.mrf.mxu1  ;;  %v1478_v43 = vadd.f32 %v1477_v51, %v1476_v0  ;;  %v1406_v24 = vadd.f32 %v3819_v56, %v1214_v59  ;;  %v1458_v60 = vadd.f32 %v1457_v11, %v1456_v5  ;;  %v1683_v48 = vmax.f32 %v1681_v26, %v1682_v27 }
 0x285   :  { %v1403_v47 = vadd.f32 %v3818_v19, %v1211_v3  ;;  %v1220_v36 = vmul.f32 %v3493_v53, %v1076_v35  ;;  %v1073_v17 = vmax.f32 %v1017_v50, 0.0  ;;  %v1032_v62 = vadd.f32 %v2093_v4, %v3820_v42 }
 0x286   :  { %v1026_v44 = vpop.f32.mrf.mxu1  ;;  %v1480_v28 = vadd.f32 %v1479_v49, %v1478_v43  ;;  %v1483_v53 = vsel %vm1461_vm1, %v1406_v24, 0.0  ;;  %v1437_v32 = vadd.f32 %v1436_v54, %v1435_v13  ;;  %v1370_v21 = vmul.f32 %v3489_v46, %v3820_v42 }
 0x287   :  { %v1481_v45 = vsel %vm1461_vm1, %v1403_v47, 0.0  ;;  %v1027_v16 = vadd.f32 %v1026_v44, %v3821_v7  ;;  %v1217_v63 = vmul.f32 %v3469_v33, %v1073_v17  ;;  %v1082_v57 = vmax.f32 %v1032_v62, 0.0 }
 0x288   :  { %v1482_v14 = vadd.f32 %v1481_v45, %v1480_v28  ;;  %v1412_v34 = vadd.f32 %v3822_v2, %v1220_v36  ;;  %v1367_v33 = vmul.f32 %v3460_v38, %v3821_v7  ;;  %v1662_v55 = vmax.f32 %v1660_v23, %v1661_v15 }
 0x289   :  { %v1079_v8 = vmax.f32 %v1027_v16, 0.0  ;;  %v1409_v6 = vadd.f32 %v3823_v31, %v1217_v63  ;;  %v1226_v9 = vmul.f32 %v3530_v22, %v1082_v57  ;;  %v1718_v12 = vmax.f32 %v1716_v29, %v1717_v41 }
 0x28a   :  { %v1484_v39 = vadd.f32 %v1483_v53, %v1482_v14  ;;  %v1459_v20 = vrot.slane %v1458_v60, 1  ;;  %v1487_v25 = vsel %vm1461_vm1, %v1412_v34, 0.0  ;;  %v1684_v61 = vrot.slane %v1683_v48, 1 }
 0x28b   :  { %v1223_v5 = vmul.f32 %v3515_v1, %v1079_v8  ;;  %v1485_v26 = vsel %vm1461_vm1, %v1409_v6, 0.0  ;;  %v1418_v38 = vadd.f32 %v1370_v21, %v1226_v9  ;;  %v1438_v10 = vrot.slane %v1437_v32, 1 }
 0x28c   :  { %v1486_v22 = vadd.f32 %v1485_v26, %v1484_v39  ;;  %v1663_v46 = vrot.slane %v1662_v55, 1  ;;  %v1719_v30 = vrot.slane %v1718_v12, 2  ;;  %v1460_v59 = vadd.f32 %v1459_v20, %v1458_v60 }
 0x28d   :  { %v1415_v58 = vadd.f32 %v1367_v33, %v1223_v5  ;;  %v1491_v40 = vsel %vm1461_vm1, %v1418_v38, 0.0  ;;  %v1685_v29 = vmax.f32 %v1683_v48, %v1684_v61  ;;  %v1439_v13 = vadd.f32 %v1438_v10, %v1437_v32  ;;  %v3824_v61 = vld [vmem:[#allocation43_spill] sm:$0xff] }
 0x28e   :  { %v1488_v1 = vadd.f32 %v1487_v25, %v1486_v22  ;;  %v1727_v3 = vstv %s3602_s3  ;;  %v1664_v35 = vmax.f32 %v1662_v55, %v1663_v46  ;;  %v1720_v51 = vmax.f32 %v1718_v12, %v1719_v30 }
 0x28f   :  { %v1489_v37 = vsel %vm1461_vm1, %v1415_v58, 0.0  ;;  %v1723_v52 = vstv %s40_s10  ;;  %v1734_v50 = vstv %s1810_s11  ;;  %v1738_v11 = vstv %s1811_s12 }
 0x290   :  { %v1490_v18 = vadd.f32 %v1489_v37, %v1488_v1  ;;  %v1725_v23 = vmul.f32 %v1723_v52, %v1460_v59  ;;  %v1736_v27 = vmul.f32 %v1734_v50, %v1460_v59  ;;  %v1729_v49 = vmul.f32 %v1727_v3, %v1685_v29 }
 0x291   :  { %v1724_v19 = vmul.f32 %v1723_v52, %v1439_v13  ;;  %v1735_v47 = vmul.f32 %v1734_v50, %v1439_v13  ;;  %v1740_v56 = vmul.f32 %v1738_v11, %v1685_v29  ;;  %v1721_v24 = vrot.slane %v1720_v51, 1 }
 0x292   :  { %v1492_v0 = vadd.f32 %v1491_v40, %v1490_v18  ;;  %v1728_v36 = vmul.f32 %v1727_v3, %v1664_v35  ;;  %v1739_v17 = vmul.f32 %v1738_v11, %v1664_v35  ;;  %v1748_v42 = vstv %s1812_s13 }
 0x293   :  { %v1732_v44 = vadd.f32 %v1729_v49, %v1725_v23  ;;  %v1743_v54 = vadd.f32 %v1740_v56, %v1736_v27  ;;  %v1752_v28 = vstv %s1813_s14  ;;  %v1750_v63 = vmul.f32 %v1748_v42, %v1460_v59 }
 0x294   :  { %v1493_v4 = vrot.slane %v1492_v0, 4  ;;  %v1731_v7 = vadd.f32 %v1728_v36, %v1724_v19  ;;  %v1742_v16 = vadd.f32 %v1739_v17, %v1735_v47  ;;  %v1722_v57 = vmax.f32 %v1720_v51, %v1721_v24 }
 0x295   :  { %v1749_v15 = vmul.f32 %v1748_v42, %v1439_v13  ;;  %v2174_v41 = vmov 1966171168   ;;  %v1746_v8 = vmax.f32 %v1732_v44, %v1743_v54  ;;  %v1754_v48 = vmul.f32 %v1752_v28, %v1685_v29 }
 0x296   :  { %v1494_v43 = vadd.f32 %v1493_v4, %v1492_v0  ;;  %v1767_v60 = vunpack.c.l.s4 %v2174_v41  ;;  %v1753_v53 = vmul.f32 %v1752_v28, %v1664_v35  ;;  %v1745_v34 = vmax.f32 %v1731_v7, %v1742_v16 }
 0x297   :  { %v1757_v31 = vadd.f32 %v1754_v48, %v1750_v63  ;;  %v1730_v6 = vmul.f32 %v1727_v3, %v1722_v57  ;;  %v1741_v9 = vmul.f32 %v1738_v11, %v1722_v57  ;;  %v1755_v20 = vmul.f32 %v1752_v28, %v1722_v57 }
 0x298   :  { %v1495_v62 = vrot.slane %v1494_v43, 2  ;;  %v1756_v33 = vadd.f32 %v1753_v53, %v1749_v15  ;;  %v1768_v32 = vunpack.c.0.s8 %v1767_v60  ;;  %v3825_v59 = vlaneseq }
 0x299   :  { %v1760_v26 = vmax.f32 %v1746_v8, %v1757_v31 }
 0x29a   :  { %v1496_v45 = vadd.f32 %v1495_v62, %v1494_v43  ;;  %v1759_v22 = vmax.f32 %v1745_v34, %v1756_v33  ;;  %v1771_v10 = vsub.s32 %v1768_v32, %v3824_v61  ;;  %vm1791_vm4 = vcmp.lt.s32.totalorder %v3825_v59, 300 }
 0x29c   :  { %v1497_v14 = vrot.slane %v1496_v45, 1  ;;  %v1765_v38 = vcombine.low %v1759_v22, %v1760_v26 }
 0x29e   :  { %v1498_v2 = vadd.f32 %v1497_v14, %v1496_v45  ;;  %v1772_v37 = vrot.slane %v1765_v38, %v1771_v10 }
 0x2a0   :  { %v1726_v39 = vmul.f32 %v1723_v52, %v1498_v2  ;;  %v1737_v5 = vmul.f32 %v1734_v50, %v1498_v2  ;;  %v1751_v21 = vmul.f32 %v1748_v42, %v1498_v2 }
 0x2a2   :  { %v1733_v55 = vadd.f32 %v1730_v6, %v1726_v39  ;;  %v1744_v12 = vadd.f32 %v1741_v9, %v1737_v5  ;;  %v1758_v25 = vadd.f32 %v1755_v20, %v1751_v21 }
 0x2a4   :  { %v1747_v58 = vmax.f32 %v1733_v55, %v1744_v12 }
 0x2a6   :  { %v1761_v1 = vmax.f32 %v1747_v58, %v1758_v25 }
 0x2a8   :  { %v1779_v46 = vrot.slane %v1761_v1, %v1771_v10 }
 0x2aa   :  { %v1780_v30 = vcombine.low %v1772_v37, %v1779_v46 }
 0x2ac   :  { %v1787_v18 = vrot.slane %v1780_v30, %v1771_v10 }
 0x2ae   :  { %1793 = vst.msk [vmem:[#allocation5] sm:$0x7] %vm1791_vm4, %v1787_v18 }
 0x2af   :  { %2157 = shalt.err (!%p2154_p9)
}
 0x2b0   :  { %1803 = dma.vmem_to_hbm [thread:$0]  %s1801_s15, 48, %s3626_s7, [#allocation3]  }
 0x2b1   :  { %2168 = dma.done.wait [#allocation3], 48  }
 0x2b2   :  { %2169 = vsyncadd [#allocation3], 4294967248 }
 0x2b3   :  { %1807 = vsyncpa [#allocation3], 1 }
 0x2b4   :  { %1808 = vsyncpa [#allocation4], 1 }

</bundles_post_ra>
